<compile_context>
chip_gen: v7x
topology: tpu7x:2x2x1
jax: 0.10.0
libtpu: 0.0.40
codegen_flags: <defaults>
</compile_context>

<pallas_src>
import functools

import jax
import jax.numpy as jnp
from jax.experimental import pallas as pl
from jax.experimental.pallas import tpu as pltpu


def _basic_se_block_kernel(x_ref, w1_ref, w2_ref, bias_ref,
                           sew1t_ref, seb1_ref, sew2t_ref, seb2_ref,
                           o_ref, *, BB, H, W, C):
    # x_ref/o_ref : (BB, H, W*C) lane-dense activation blocks (f32)
    # w1_ref/w2_ref: (3*W*C, W*C) bf16 BN-folded block-banded conv weights
    # bias_ref    : (1, W*C) f32 folded-BN bias (per-channel, tiled across w)
    # sew1t_ref   : (Cr, C), seb1_ref: (1, Cr), sew2t_ref: (C, Cr), seb2_ref: (1, C)
    WC = W * C
    x = x_ref[...].astype(jnp.float32)                              # (BB, H, WC)

    def conv_bn(inp, w_ref):
        # 3x3 conv, stride 1, zero padding, + folded-BN bias.
        # h-padding: two sublane-shifted copies (masked concat, XLU).
        # w-padding + the three dw taps live inside the banded weight, so
        # there are no lane rolls, no pad scratch and no im2col relayout.
        zrow = jnp.zeros((BB, 1, WC), jnp.float32)
        up = jnp.concatenate([zrow, inp[:, :H - 1, :]], axis=1)     # row h-1
        dn = jnp.concatenate([inp[:, 1:, :], zrow], axis=1)         # row h+1
        patch = jnp.concatenate([up, inp, dn], axis=-1)             # (BB, H, 3*WC)
        patch = patch.reshape(BB * H, 3 * WC).astype(jnp.bfloat16)  # lane-aligned
        y = jnp.dot(patch, w_ref[...],
                    preferred_element_type=jnp.float32)             # (BB*H, WC)
        return (y + bias_ref[...]).reshape(BB, H, WC)

    # conv1 -> (folded) BN -> relu ; conv2 -> (folded) BN  (same BN reused,
    # exactly as in the torch module).
    h1 = jnp.maximum(conv_bn(x, w1_ref), 0.0)
    h2 = conv_bn(h1, w2_ref)                                        # (BB, H, WC)

    # --- Squeeze-and-Excitation: global avg pool -> c/r -> relu -> c -> sigmoid
    # (tiny shapes: keep it on the VPU, no MXU push/pop on the serial tail)
    pooled = jnp.mean(h2, axis=1)                                   # (BB, WC)
    pooled = jnp.mean(pooled.reshape(BB, W, C), axis=1)             # (BB, C)
    hid = jnp.maximum(
        jnp.sum(pooled[:, None, :] * sew1t_ref[...][None, :, :], axis=-1)
        + seb1_ref[...], 0.0)                                       # (BB, Cr)
    gate = jax.nn.sigmoid(
        jnp.sum(hid[:, None, :] * sew2t_ref[...][None, :, :], axis=-1)
        + seb2_ref[...])                                            # (BB, C)
    gate_wc = jnp.tile(gate, (1, W))[:, None, :]                    # (BB, 1, WC)

    # scale, residual add (stride=1, downsample=None), final relu
    out = jnp.maximum(h2 * gate_wc + x, 0.0)
    o_ref[...] = out.astype(o_ref.dtype)                            # lane-dense store


def basic_se_block(x_nchw, params, eps=1e-5):
    (w1, w2, gamma, beta, mean, var, sew1, seb1, sew2, seb2) = params
    B, C, H, W = x_nchw.shape
    Cr = sew1.shape[1]
    WC = W * C

    # ---- fold inference-mode BatchNorm into the conv weights + bias ----------
    scale = gamma * jax.lax.rsqrt(var + eps)                        # (C,)
    shift = beta - mean * scale                                     # (C,)

    def banded_weight(w_oihw):
        # Build the block-banded lane-dense weight:
        #   Wb[dh][w_in*C + ci, w_out*C + co] = W[dh, w_in-w_out+1, ci, co]
        # for |w_in - w_out| <= 1, else 0 (this also implements zero padding
        # in w).  The three dh bands are stacked vertically -> (3*W*C, W*C).
        w = jnp.transpose(w_oihw, (2, 3, 1, 0)) * scale[None, None, None, :]  # HWIO
        wi = jnp.arange(W)[:, None]
        wo = jnp.arange(W)[None, :]
        dw = wi - wo + 1                                            # (W, W)
        valid = ((dw >= 0) & (dw <= 2)).astype(w.dtype)
        dwc = jnp.clip(dw, 0, 2)
        bands = []
        for dh in range(3):
            blk = w[dh][dwc] * valid[:, :, None, None]              # (W, W, C, C)
            bands.append(jnp.transpose(blk, (0, 2, 1, 3)).reshape(WC, WC))
        return jnp.concatenate(bands, axis=0).astype(jnp.bfloat16)  # (3*WC, WC)

    w1b = banded_weight(w1)
    w2b = banded_weight(w2)
    bias_row = jnp.tile(shift, W).reshape(1, WC)                    # [w*C+co] = shift[co]
    sew1t = sew1.T                                                  # (Cr, C)
    sew2t = sew2.T                                                  # (C, Cr)
    seb1r = seb1.reshape(1, Cr)
    seb2r = seb2.reshape(1, C)

    # ---- lane-dense activation layout: NCHW -> NHWC -> (B, H, W*C) -----------
    # (W*C a multiple of 128 -> unmasked vector stores; other shapes still run
    #  via full-extent blocks, just with masked lanes.)
    x3 = jnp.transpose(x_nchw, (0, 2, 3, 1)).reshape(B, H, WC)

    # ---- batch tiling: padding + cdiv grid (no divisor-walk degeneration) ----
    # Target ~512 output pixels per grid step to amortize per-step overhead,
    # but keep >= 2 grid steps whenever B >= 2 so the "parallel" batch axis
    # actually shards across both v7x TensorCores.
    HW = H * W
    bb = max(1, min(B, max(1, 512 // HW)))
    if B >= 2:
        bb = min(bb, pl.cdiv(B, 2))
    grid_b = pl.cdiv(B, bb)
    Bp = grid_b * bb
    if Bp != B:
        x3 = jnp.pad(x3, ((0, Bp - B), (0, 0), (0, 0)))

    kernel = functools.partial(_basic_se_block_kernel, BB=bb, H=H, W=W, C=C)

    # Constant index_maps -> weight/bias/SE blocks stay VMEM-resident across
    # grid steps (no re-DMA).
    def const_spec(arr):
        nd = arr.ndim
        return pl.BlockSpec(arr.shape, lambda i: (0,) * nd)

    out3 = pl.pallas_call(
        kernel,
        out_shape=jax.ShapeDtypeStruct((Bp, H, WC), x_nchw.dtype),
        grid_spec=pltpu.PrefetchScalarGridSpec(
            num_scalar_prefetch=0,
            grid=(grid_b,),
            in_specs=[
                pl.BlockSpec((bb, H, WC), lambda i: (i, 0, 0)),      # x
                const_spec(w1b), const_spec(w2b), const_spec(bias_row),
                const_spec(sew1t), const_spec(seb1r),                # SE fc1
                const_spec(sew2t), const_spec(seb2r),                # SE fc2
            ],
            out_specs=pl.BlockSpec((bb, H, WC), lambda i: (i, 0, 0)),
        ),
        compiler_params=pltpu.CompilerParams(
            dimension_semantics=("parallel",)),
    )(x3, w1b, w2b, bias_row, sew1t, seb1r, sew2t, seb2r)

    out3 = out3[:B]
    out_nhwc = out3.reshape(B, H, W, C)
    return jnp.transpose(out_nhwc, (0, 3, 1, 2))                    # NHWC -> NCHW


def ref_forward(x, params, eps=1e-5):
    """Pure-JAX f32 reference (NCHW, matches the torch forward semantics)."""
    (w1, w2, gamma, beta, mean, var, sew1, seb1, sew2, seb2) = params

    def conv(inp, w):
        return jax.lax.conv_general_dilated(
            inp, w, window_strides=(1, 1), padding=((1, 1), (1, 1)),
            dimension_numbers=("NCHW", "OIHW", "NCHW"))

    scale = gamma * jax.lax.rsqrt(var + eps)
    shift = beta - mean * scale

    def bn(t):
        return t * scale[None, :, None, None] + shift[None, :, None, None]

    out = jnp.maximum(bn(conv(x, w1)), 0.0)
    out = bn(conv(out, w2))
    pooled = out.mean(axis=(2, 3))                                   # (B, C)
    h = jnp.maximum(pooled @ sew1 + seb1, 0.0)
    s = jax.nn.sigmoid(h @ sew2 + seb2)
    out = out * s[:, :, None, None]
    return jnp.maximum(out + x, 0.0)


if __name__ == "__main__":
    B, C, H, W = 2, 32, 8, 8
    reduction = 4
    Cr = C // reduction

    key = jax.random.PRNGKey(0)
    ks = jax.random.split(key, 11)
    w1 = 0.1 * jax.random.normal(ks[0], (C, C, 3, 3), jnp.float32)   # OIHW
    w2 = 0.1 * jax.random.normal(ks[1], (C, C, 3, 3), jnp.float32)   # OIHW
    gamma = 1.0 + 0.1 * jax.random.normal(ks[2], (C,), jnp.float32)
    beta = 0.1 * jax.random.normal(ks[3], (C,), jnp.float32)
    mean = 0.1 * jax.random.normal(ks[4], (C,), jnp.float32)
    var = jnp.abs(jax.random.normal(ks[5], (C,), jnp.float32)) + 0.5
    sew1 = 0.1 * jax.random.normal(ks[6], (C, Cr), jnp.float32)
    seb1 = 0.1 * jax.random.normal(ks[7], (Cr,), jnp.float32)
    sew2 = 0.1 * jax.random.normal(ks[8], (Cr, C), jnp.float32)
    seb2 = 0.1 * jax.random.normal(ks[9], (C,), jnp.float32)
    x = jax.random.normal(ks[10], (B, C, H, W), jnp.float32)

    params = (w1, w2, gamma, beta, mean, var, sew1, seb1, sew2, seb2)

    out = jax.block_until_ready(basic_se_block(x, params))
    ref = jax.block_until_ready(ref_forward(x, params))

    assert out.shape == (B, C, H, W)
    # bf16 MXU operands with f32 accumulation -> tolerance relaxed vs the f32
    # reference (observed error is typically ~1e-2 at these magnitudes).
    err = jnp.max(jnp.abs(out - ref))
    assert jnp.allclose(out, ref, rtol=5e-2, atol=5e-2), f"max abs err {err}"
    print("KERNEL_OK")
</pallas_src>

<mosaic_0001>
module attributes {stable_mosaic.version = 11 : i64} {
  func.func @_basic_se_block_kernel(%arg0: i32, %arg1: memref<1x8x256xf32, #tpu.memory_space<vmem>>, %arg2: memref<768x256xbf16, #tpu.memory_space<vmem>>, %arg3: memref<768x256xbf16, #tpu.memory_space<vmem>>, %arg4: memref<1x256xf32, #tpu.memory_space<vmem>>, %arg5: memref<8x32xf32, #tpu.memory_space<vmem>>, %arg6: memref<1x8xf32, #tpu.memory_space<vmem>>, %arg7: memref<32x8xf32, #tpu.memory_space<vmem>>, %arg8: memref<1x32xf32, #tpu.memory_space<vmem>>, %arg9: memref<1x8x256xf32, #tpu.memory_space<vmem>>) attributes {dimension_semantics = [#tpu.dimension_semantics<parallel>], iteration_bounds = array<i64: 2>, scalar_prefetch = 0 : i64, scratch_operands = 0 : i64, tpu.core_type = #tpu.core_type<tc>, window_params = [{transform_indices = @transform_0, window_bounds = array<i64: 1, 8, 256>}, {pipeline_mode = #tpu.pipeline_mode<synchronous>, transform_indices = @transform_1, window_bounds = array<i64: 768, 256>}, {pipeline_mode = #tpu.pipeline_mode<synchronous>, transform_indices = @transform_2, window_bounds = array<i64: 768, 256>}, {pipeline_mode = #tpu.pipeline_mode<synchronous>, transform_indices = @transform_3, window_bounds = array<i64: 1, 256>}, {pipeline_mode = #tpu.pipeline_mode<synchronous>, transform_indices = @transform_4, window_bounds = array<i64: 8, 32>}, {pipeline_mode = #tpu.pipeline_mode<synchronous>, transform_indices = @transform_5, window_bounds = array<i64: 1, 8>}, {pipeline_mode = #tpu.pipeline_mode<synchronous>, transform_indices = @transform_6, window_bounds = array<i64: 32, 8>}, {pipeline_mode = #tpu.pipeline_mode<synchronous>, transform_indices = @transform_7, window_bounds = array<i64: 1, 32>}, {transform_indices = @transform_8, window_bounds = array<i64: 1, 8, 256>}]} {
    %c0 = arith.constant 0 : index
    %c0_0 = arith.constant 0 : index
    %c0_1 = arith.constant 0 : index
    %0 = vector.load %arg1[%c0, %c0_0, %c0_1] : memref<1x8x256xf32, #tpu.memory_space<vmem>>, vector<1x8x256xf32>
    %cst = arith.constant 0.000000e+00 : f32
    %1 = vector.broadcast %cst : f32 to vector<1x1x256xf32>
    %2 = vector.extract_strided_slice %0 {offsets = [0, 0, 0], sizes = [1, 7, 256], strides = [1, 1, 1]} : vector<1x8x256xf32> to vector<1x7x256xf32>
    %3 = tpu.concatenate %1, %2 in 1 : vector<1x1x256xf32>, vector<1x7x256xf32> -> vector<1x8x256xf32>
    %4 = vector.extract_strided_slice %0 {offsets = [0, 1, 0], sizes = [1, 7, 256], strides = [1, 1, 1]} : vector<1x8x256xf32> to vector<1x7x256xf32>
    %5 = tpu.concatenate %4, %1 in 1 : vector<1x7x256xf32>, vector<1x1x256xf32> -> vector<1x8x256xf32>
    %6 = tpu.concatenate %3, %0, %5 in 2 : vector<1x8x256xf32>, vector<1x8x256xf32>, vector<1x8x256xf32> -> vector<1x8x768xf32>
    %7 = vector.shape_cast %6 : vector<1x8x768xf32> to vector<8x768xf32>
    %8 = arith.truncf %7 : vector<8x768xf32> to vector<8x768xbf16>
    %c0_2 = arith.constant 0 : index
    %c0_3 = arith.constant 0 : index
    %9 = vector.load %arg2[%c0_2, %c0_3] : memref<768x256xbf16, #tpu.memory_space<vmem>>, vector<768x256xbf16>
    %cst_4 = arith.constant dense<0.000000e+00> : vector<8x256xf32>
    %10 = tpu.matmul %8, %9, %cst_4 {dimension_numbers = #tpu.dot_dimension_numbers<[1], [0], [0], [1], [0, 0, 1, 1], [], []>} : vector<8x768xbf16>, vector<768x256xbf16>, vector<8x256xf32> -> vector<8x256xf32>
    %c0_5 = arith.constant 0 : index
    %c0_6 = arith.constant 0 : index
    %11 = vector.load %arg4[%c0_5, %c0_6] : memref<1x256xf32, #tpu.memory_space<vmem>>, vector<1x256xf32>
    %12 = vector.broadcast %11 : vector<1x256xf32> to vector<8x256xf32>
    %13 = arith.addf %10, %12 : vector<8x256xf32>
    %14 = vector.shape_cast %13 : vector<8x256xf32> to vector<1x8x256xf32>
    %cst_7 = arith.constant 0.000000e+00 : f32
    %15 = vector.broadcast %cst_7 : f32 to vector<1x8x256xf32>
    %16 = arith.maximumf %14, %15 : vector<1x8x256xf32>
    %cst_8 = arith.constant 0.000000e+00 : f32
    %17 = vector.broadcast %cst_8 : f32 to vector<1x1x256xf32>
    %18 = vector.extract_strided_slice %16 {offsets = [0, 0, 0], sizes = [1, 7, 256], strides = [1, 1, 1]} : vector<1x8x256xf32> to vector<1x7x256xf32>
    %19 = tpu.concatenate %17, %18 in 1 : vector<1x1x256xf32>, vector<1x7x256xf32> -> vector<1x8x256xf32>
    %20 = vector.extract_strided_slice %16 {offsets = [0, 1, 0], sizes = [1, 7, 256], strides = [1, 1, 1]} : vector<1x8x256xf32> to vector<1x7x256xf32>
    %21 = tpu.concatenate %20, %17 in 1 : vector<1x7x256xf32>, vector<1x1x256xf32> -> vector<1x8x256xf32>
    %22 = tpu.concatenate %19, %16, %21 in 2 : vector<1x8x256xf32>, vector<1x8x256xf32>, vector<1x8x256xf32> -> vector<1x8x768xf32>
    %23 = vector.shape_cast %22 : vector<1x8x768xf32> to vector<8x768xf32>
    %24 = arith.truncf %23 : vector<8x768xf32> to vector<8x768xbf16>
    %c0_9 = arith.constant 0 : index
    %c0_10 = arith.constant 0 : index
    %25 = vector.load %arg3[%c0_9, %c0_10] : memref<768x256xbf16, #tpu.memory_space<vmem>>, vector<768x256xbf16>
    %cst_11 = arith.constant dense<0.000000e+00> : vector<8x256xf32>
    %26 = tpu.matmul %24, %25, %cst_11 {dimension_numbers = #tpu.dot_dimension_numbers<[1], [0], [0], [1], [0, 0, 1, 1], [], []>} : vector<8x768xbf16>, vector<768x256xbf16>, vector<8x256xf32> -> vector<8x256xf32>
    %c0_12 = arith.constant 0 : index
    %c0_13 = arith.constant 0 : index
    %27 = vector.load %arg4[%c0_12, %c0_13] : memref<1x256xf32, #tpu.memory_space<vmem>>, vector<1x256xf32>
    %28 = vector.broadcast %27 : vector<1x256xf32> to vector<8x256xf32>
    %29 = arith.addf %26, %28 : vector<8x256xf32>
    %30 = vector.shape_cast %29 : vector<8x256xf32> to vector<1x8x256xf32>
    %cst_14 = arith.constant dense<0.000000e+00> : vector<1x256xf32>
    %31 = vector.multi_reduction <add>, %30, %cst_14 [1] : vector<1x8x256xf32> to vector<1x256xf32>
    %cst_15 = arith.constant 8.000000e+00 : f32
    %32 = vector.broadcast %cst_15 : f32 to vector<1x256xf32>
    %33 = arith.divf %31, %32 : vector<1x256xf32>
    %34 = vector.shape_cast %33 : vector<1x256xf32> to vector<1x8x32xf32>
    %cst_16 = arith.constant dense<0.000000e+00> : vector<1x32xf32>
    %35 = vector.multi_reduction <add>, %34, %cst_16 [1] : vector<1x8x32xf32> to vector<1x32xf32>
    %cst_17 = arith.constant 8.000000e+00 : f32
    %36 = vector.broadcast %cst_17 : f32 to vector<1x32xf32>
    %37 = arith.divf %35, %36 : vector<1x32xf32>
    %38 = vector.shape_cast %37 : vector<1x32xf32> to vector<1x1x32xf32>
    %c0_18 = arith.constant 0 : index
    %c0_19 = arith.constant 0 : index
    %39 = vector.load %arg5[%c0_18, %c0_19] : memref<8x32xf32, #tpu.memory_space<vmem>>, vector<8x32xf32>
    %40 = vector.shape_cast %39 : vector<8x32xf32> to vector<1x8x32xf32>
    %41 = vector.broadcast %38 : vector<1x1x32xf32> to vector<1x8x32xf32>
    %42 = arith.mulf %41, %40 : vector<1x8x32xf32>
    %cst_20 = arith.constant dense<0.000000e+00> : vector<1x8xf32>
    %43 = vector.multi_reduction <add>, %42, %cst_20 [2] : vector<1x8x32xf32> to vector<1x8xf32>
    %c0_21 = arith.constant 0 : index
    %c0_22 = arith.constant 0 : index
    %44 = vector.load %arg6[%c0_21, %c0_22] : memref<1x8xf32, #tpu.memory_space<vmem>>, vector<1x8xf32>
    %45 = arith.addf %43, %44 : vector<1x8xf32>
    %cst_23 = arith.constant 0.000000e+00 : f32
    %46 = vector.broadcast %cst_23 : f32 to vector<1x8xf32>
    %47 = arith.maximumf %45, %46 : vector<1x8xf32>
    %48 = vector.shape_cast %47 : vector<1x8xf32> to vector<1x1x8xf32>
    %c0_24 = arith.constant 0 : index
    %c0_25 = arith.constant 0 : index
    %49 = vector.load %arg7[%c0_24, %c0_25] : memref<32x8xf32, #tpu.memory_space<vmem>>, vector<32x8xf32>
    %50 = vector.shape_cast %49 : vector<32x8xf32> to vector<1x32x8xf32>
    %51 = vector.broadcast %48 : vector<1x1x8xf32> to vector<1x32x8xf32>
    %52 = arith.mulf %51, %50 : vector<1x32x8xf32>
    %cst_26 = arith.constant dense<0.000000e+00> : vector<1x32xf32>
    %53 = vector.multi_reduction <add>, %52, %cst_26 [2] : vector<1x32x8xf32> to vector<1x32xf32>
    %c0_27 = arith.constant 0 : index
    %c0_28 = arith.constant 0 : index
    %54 = vector.load %arg8[%c0_27, %c0_28] : memref<1x32xf32, #tpu.memory_space<vmem>>, vector<1x32xf32>
    %55 = arith.addf %53, %54 : vector<1x32xf32>
    %56 = arith.negf %55 : vector<1x32xf32>
    %57 = math.exp %56 : vector<1x32xf32>
    %cst_29 = arith.constant 1.000000e+00 : f32
    %58 = vector.broadcast %cst_29 : f32 to vector<1x32xf32>
    %59 = arith.addf %58, %57 : vector<1x32xf32>
    %60 = arith.divf %58, %59 : vector<1x32xf32>
    %61 = tpu.concatenate %60, %60, %60, %60, %60, %60, %60, %60 in 1 : vector<1x32xf32>, vector<1x32xf32>, vector<1x32xf32>, vector<1x32xf32>, vector<1x32xf32>, vector<1x32xf32>, vector<1x32xf32>, vector<1x32xf32> -> vector<1x256xf32>
    %62 = vector.shape_cast %61 : vector<1x256xf32> to vector<1x1x256xf32>
    %63 = vector.broadcast %62 : vector<1x1x256xf32> to vector<1x8x256xf32>
    %64 = arith.mulf %30, %63 : vector<1x8x256xf32>
    %65 = arith.addf %64, %0 : vector<1x8x256xf32>
    %cst_30 = arith.constant 0.000000e+00 : f32
    %66 = vector.broadcast %cst_30 : f32 to vector<1x8x256xf32>
    %67 = arith.maximumf %65, %66 : vector<1x8x256xf32>
    %c0_31 = arith.constant 0 : index
    %c0_32 = arith.constant 0 : index
    %c0_33 = arith.constant 0 : index
    %68 = vector.load %arg9[%c0_31, %c0_32, %c0_33] : memref<1x8x256xf32, #tpu.memory_space<vmem>>, vector<1x8x256xf32>
    tpu.vector_store %arg9[%c0_31, %c0_32, %c0_33], %67 {strides = array<i32>} : memref<1x8x256xf32, #tpu.memory_space<vmem>>, vector<1x8x256xf32>,
    return
  }
  func.func @transform_0(%arg0: i32) -> (i32, i32, i32) {
    %c0_i32 = arith.constant 0 : i32
    %c0_i32_0 = arith.constant 0 : i32
    %c0_i32_1 = arith.constant 0 : i32
    return %arg0, %c0_i32, %c0_i32_0 : i32, i32, i32
  }
  func.func @transform_1(%arg0: i32) -> (i32, i32) {
    %c0_i32 = arith.constant 0 : i32
    %c0_i32_0 = arith.constant 0 : i32
    %c0_i32_1 = arith.constant 0 : i32
    return %c0_i32, %c0_i32_0 : i32, i32
  }
  func.func @transform_2(%arg0: i32) -> (i32, i32) {
    %c0_i32 = arith.constant 0 : i32
    %c0_i32_0 = arith.constant 0 : i32
    %c0_i32_1 = arith.constant 0 : i32
    return %c0_i32, %c0_i32_0 : i32, i32
  }
  func.func @transform_3(%arg0: i32) -> (i32, i32) {
    %c0_i32 = arith.constant 0 : i32
    %c0_i32_0 = arith.constant 0 : i32
    %c0_i32_1 = arith.constant 0 : i32
    return %c0_i32, %c0_i32_0 : i32, i32
  }
  func.func @transform_4(%arg0: i32) -> (i32, i32) {
    %c0_i32 = arith.constant 0 : i32
    %c0_i32_0 = arith.constant 0 : i32
    %c0_i32_1 = arith.constant 0 : i32
    return %c0_i32, %c0_i32_0 : i32, i32
  }
  func.func @transform_5(%arg0: i32) -> (i32, i32) {
    %c0_i32 = arith.constant 0 : i32
    %c0_i32_0 = arith.constant 0 : i32
    %c0_i32_1 = arith.constant 0 : i32
    return %c0_i32, %c0_i32_0 : i32, i32
  }
  func.func @transform_6(%arg0: i32) -> (i32, i32) {
    %c0_i32 = arith.constant 0 : i32
    %c0_i32_0 = arith.constant 0 : i32
    %c0_i32_1 = arith.constant 0 : i32
    return %c0_i32, %c0_i32_0 : i32, i32
  }
  func.func @transform_7(%arg0: i32) -> (i32, i32) {
    %c0_i32 = arith.constant 0 : i32
    %c0_i32_0 = arith.constant 0 : i32
    %c0_i32_1 = arith.constant 0 : i32
    return %c0_i32, %c0_i32_0 : i32, i32
  }
  func.func @transform_8(%arg0: i32) -> (i32, i32, i32) {
    %c0_i32 = arith.constant 0 : i32
    %c0_i32_0 = arith.constant 0 : i32
    %c0_i32_1 = arith.constant 0 : i32
    return %arg0, %c0_i32, %c0_i32_0 : i32, i32, i32
  }
}

</mosaic_0001>

<bundles_post_ra>
// kernel: tpu_custom_call.1
= control target key start
LH: loop header
LB: loop body
LE: loop exit
PB: predicated region body
PF: predicated region fallthrough
CT: control target
= control target key end

     0   :  { %13 = vsyncpa [#allocation3], 0  ;;  %s4168_s0 = inlined_call_operand.vmem [shape: f32[2,8,256], index: 0, kind: input, shape index: {}]   ;;  %s4169_s1 = inlined_call_operand.hbm [shape: bf16[768,256], index: 1, kind: input, shape index: {}]   ;;  %s4170_s2 = inlined_call_operand.hbm [shape: bf16[768,256], index: 2, kind: input, shape index: {}]   ;;  %s4171_s3 = inlined_call_operand.vmem [shape: f32[1,256], index: 3, kind: input, shape index: {}]   ;;  %s4172_s4 = inlined_call_operand.vmem [shape: f32[8,32], index: 4, kind: input, shape index: {}]   ;;  %s4173_s5 = inlined_call_operand.vmem [shape: f32[1,8], index: 5, kind: input, shape index: {}]   ;;  %s4174_s6 = inlined_call_operand.vmem [shape: f32[32,8], index: 6, kind: input, shape index: {}]   ;;  %s4175_s7 = inlined_call_operand.vmem [shape: f32[1,32], index: 7, kind: input, shape index: {}]   ;;  %s4176_s8 = inlined_call_operand.hbm [shape: f32[2,8,256], index: 8, kind: output, shape index: {}]  }
   0x1   :  { %14 = vsyncpa [#allocation6], 0 }
   0x2   :  { %15 = vsyncpa [#allocation4], 0 }
   0x3   :  { %17 = vsyncpa [#allocation4 + $0x1], 0  ;;  %s3623_s27 = smov 0   ;;  %s3625_s28 = smov 0  }
   0x4   :  { %s3627_s29 = smov 0   ;;  %s3629_s30 = smov 0  }
   0x5 LB: > { %4181 = sst [smem:[#allocation11_spill]] %s3561_s29  ;;  %s3644_s9 = sadd.s32 4294967295, %s3565_s30   ;;  %s3565_s30 = sphi %s3629_s30, %s4202_s30   ;;  %s3561_s29 = sphi %s3627_s29, %s4199_s29   ;;  %s3557_s28 = sphi %s3625_s28, %s4201_s28   ;;  %s3553_s27 = sphi %s3623_s27, %s4200_s27  }
   0x6   : > { %s2795_s10 = sadd.s32 4294967294, %s3565_s30   ;;  %s3648_s11 = sadd.s32 1, %s3565_s30  }
   0x7   : > { %s203_s12 = sadd.s32 1, %s3561_s29  ;;  %s200_s13 = ssub.s32 %s3565_s30, %s3648_s11 }
   0x8   : > { %p213_p0 = scmp.ne.s32.totalorder %s3561_s29, %s3557_s28  ;;  %p201_p1 = scmp.eq.s32.totalorder %s200_s13, 0 }
   0x9   : > { %p214_p2 = scmp.eq.s32.totalorder %s3644_s9, 1  ;;  %p219_p3 = scmp.ne.s32.totalorder %s3557_s28, %s3553_s27 }
   0xa   : > { %p220_p4 = scmp.eq.s32.totalorder %s2795_s10, 1  ;;  %p2796_p7 = scmp.ge.s32.totalorder %s3565_s30, 1 }
   0xb   : > { %s3659_s14 = scalar_select %p201_p1, %s3561_s29, %s203_s12  }
   0xc   : > { %p3661_p5 = por %p214_p2, %p213_p0  ;;  %p3665_p6 = por %p220_p4, %p219_p3 }
   0xd   : > { %4182 = sst [smem:[#allocation12_spill]] %s3659_s14  ;;  %p227_p8 = scmp.lt.s32.totalorder %s3565_s30, 3 }
   0xe   : > { %s4183_s15 = scalar_select %p3661_p5, 1, 0 }
   0xf   : > { %s4184_s16 = scalar_select %p3665_p6, 1, 0 }
  0x10   : > { %p4177_p9 = scmp.eq.s32.totalorder %s3644_s9, 0  ;;  %p3672_p10 = pnand %p2796_p7, %p227_p8 }
  0x11   : > { %s3567_s18 = smov [#allocation2]   ;;  %s3568_s21 = smov [#allocation5]  }
  0x12   : > { %s4185_s17 = scalar_select %p3672_p10, 1, 0 }
  0x13   : > { %s239_s19 = sshll.u32 %s3567_s18, 4  ;;  %p3073_p11 = pneg %p3672_p10  ;;  %s240_s19 = int_to_ptr.vmem [resolvable:$true] %s239_s19 }
  0x14   : > { %s252_s22 = sshll.u32 %s3568_s21, 4  ;;  %s3439_s25 = scalar_lea.hbm %s4169_s1, 12288  ;;  %s3684_s22 = int_to_ptr.vmem [resolvable:$true] %s252_s22 }
  0x15   : > { %p3680_p12 = pnand %p4177_p9, %p3073_p11  ;;  %p3440_p13 = scmp.ne.s32.totalorder %s4169_s1, %s3439_s25 }
  0x16   : > { %p3446_p3 = scmp.lt.u32.totalorder %s3439_s25, %s4169_s1 }
  0x17   : > { %p3441_p0 = pneg %p3680_p12 }
  0x19   : > { %p3442_p1 = pnand %p3441_p0, %p3440_p13 }
  0x1b   : > { %p3443_p2 = pneg %p3442_p1 }
  0x1d   : > { %p3448_p4 = pnand %p3446_p3, %p3443_p2 }
  0x1f   : > { %3451 = shalt.err (!%p3448_p4)
}
  0x20   : > { %s3452_s18 = scalar_lea.vmem %s240_s19, 12288  ;;  %p3460_p9 = scmp.lt.s32.totalorder %s240_s19, %s240_s19 }
  0x21   : > { %p3453_p7 = scmp.ne.s32.totalorder %s240_s19, %s3452_s18  ;;  %p3461_p6 = scmp.lt.s32.totalorder %s3452_s18, %s3452_s18 }
  0x23   : > { %p3455_p8 = pnand %p3453_p7, %p3441_p0  ;;  %p3462_p5 = por %p3461_p6, %p3460_p9 }
  0x25   : > { %p3456_p11 = pneg %p3455_p8 }
  0x27   : > { %p3463_p10 = pnand %p3462_p5, %p3456_p11 }
  0x29   : > { %3466 = shalt.err (!%p3463_p10)
}
  0x2a   : > { %s3569_s21 = smov 128   ;;  %s3570_s23 = smov 8  }
  0x2b   : > { %3076 = dma.hbm_to_vmem [thread:$0]  (!%p3680_p12), %s4169_s1, 12288, %s240_s19, [#allocation3], %s3569_s21, %s3569_s21, %s3570_s23  }
  0x2c   : > { %s3467_s12 = scalar_lea.hbm %s4170_s2, 12288 }
  0x2d   : > { %p3468_p13 = scmp.ne.s32.totalorder %s4170_s2, %s3467_s12  ;;  %p3474_p9 = scmp.lt.u32.totalorder %s3467_s12, %s4170_s2 }
  0x2f   : > { %p3470_p5 = pnand %p3468_p13, %p3441_p0 }
  0x31   : > { %p3471_p6 = pneg %p3470_p5 }
  0x33   : > { %p3476_p10 = pnand %p3474_p9, %p3471_p6 }
  0x35   : > { %3479 = shalt.err (!%p3476_p10)
}
  0x36   : > { %s3480_s19 = scalar_lea.vmem %s3684_s22, 12288  ;;  %p3488_p4 = scmp.lt.s32.totalorder %s3684_s22, %s3684_s22 }
  0x37   : > { %p3481_p1 = scmp.ne.s32.totalorder %s3684_s22, %s3480_s19  ;;  %p3489_p7 = scmp.lt.s32.totalorder %s3480_s19, %s3480_s19 }
  0x39   : > { %p3483_p2 = pnand %p3481_p1, %p3441_p0  ;;  %p3490_p8 = por %p3489_p7, %p3488_p4 }
  0x3b   : > { %p3484_p3 = pneg %p3483_p2 }
  0x3d   : > { %p3491_p11 = pnand %p3490_p8, %p3484_p3 }
  0x3f   : > { %3494 = shalt.err (!%p3491_p11)
}
  0x40   : > { %3079 = dma.hbm_to_vmem [thread:$0]  (!%p3680_p12), %s4170_s2, 12288, %s3684_s22, [#allocation6], %s3569_s21, %s3569_s21, %s3570_s23  }
  0x41   : > { %p4187_p13 = scmp.ne.s32.totalorder %s4185_s17, 0 }
  0x42   : > { %p4188_p5 = scmp.eq.s32.totalorder (!%p4187_p13), %s3644_s9, 0 }
  0x43   : > { %291 = sbr.rel (%p4187_p13) target bundleno = 1676 (0x68c), region = 52 }
  0x4a   : > { %3540 = dma.done.wait (%p4188_p5), [#allocation3], 12288   ;;  %p4189_p0 = pmov %p4188_p5 }
  0x4c   : > { %3542 = vsyncadd (%p4189_p0), [#allocation3], 4294955008  ;;  %p4190_p6 = pmov %p4189_p0 }
  0x4d   : > { %p4191_p9 = pmov %p4189_p0 }
  0x4e   : > { %3544 = dma.done.wait (%p4190_p6), [#allocation6], 12288  }
  0x4f   : > { %3546 = vsyncadd (%p4191_p9), [#allocation6], 4294955008  ;;  %v3133_v0 = vld [vmem:[#allocation2 + $0x4] ss:$8 sps:$4 sm:$0xff]   ;;  %v3135_v1 = vld [vmem:[#allocation2] ss:$8 sps:$4 sm:$0xff]  }
  0x50   : > { %946 = vmatprep.subr.bf16.mxu0 %v3133_v0  ;;  %v3136_v2 = vld [vmem:[#allocation2 + $0x14] ss:$8 sps:$4 sm:$0xff]   ;;  %v3138_v3 = vld [vmem:[#allocation2 + $0x10] ss:$8 sps:$4 sm:$0xff]   ;;  %v3139_v4 = vld [vmem:[#allocation2 + $0x24] ss:$8 sps:$4 sm:$0xff]  }
  0x51   : > { %947 = vmatpush1.bf16.msra.mxu0 %v3135_v1  ;;  %v3141_v5 = vld [vmem:[#allocation2 + $0x20] ss:$8 sps:$4 sm:$0xff]   ;;  %p329_p12 = scmp.lt.s32.totalorder %s3644_s9, 1  ;;  %v3142_v6 = vld [vmem:[#allocation2 + $0x34] ss:$8 sps:$4 sm:$0xff]   ;;  %vm342_vm0 = vcmask 1040384  }
  0x52   : > { %948 = vmatprep.subr.bf16.mxu0 %v3136_v2  ;;  %v3144_v7 = vld [vmem:[#allocation2 + $0x30] ss:$8 sps:$4 sm:$0xff]   ;;  %v3145_v8 = vld [vmem:[#allocation2 + $0x44] ss:$8 sps:$4 sm:$0xff]   ;;  %v3147_v9 = vld [vmem:[#allocation2 + $0x40] ss:$8 sps:$4 sm:$0xff]  }
  0x53   : > { %s330_s17 = scalar_select %p329_p12, %s3644_s9, 1  ;;  %v3148_v10 = vld [vmem:[#allocation2 + $0x54] ss:$8 sps:$4 sm:$0xff]   ;;  %v3150_v11 = vld [vmem:[#allocation2 + $0x50] ss:$8 sps:$4 sm:$0xff]   ;;  %vm2902_vm1 = vmneg %vm342_vm0  ;;  %vm349_vm3 = vcmask 1046528  }
  0x54   : > { %v3151_v12 = vld [vmem:[#allocation2 + $0x64] ss:$8 sps:$4 sm:$0xff]   ;;  %vm3754_vm2 = vmpackc.low %vm2902_vm1, %vm2902_vm1  ;;  %v3153_v16 = vld [vmem:[#allocation2 + $0x60] ss:$8 sps:$4 sm:$0xff]   ;;  %s3571_s26 = smov 32   ;;  %s3572_s10 = smov 96  }
  0x55   : > { %949 = vmatpush1.bf16.msra.mxu0 %v3138_v3  ;;  %s3041_s20 = sshll.u32 %s330_s17, 4  ;;  %v3154_v17 = vld [vmem:[#allocation2 + $0x74] ss:$8 sps:$4 sm:$0xff]   ;;  %v3156_v19 = vld [vmem:[#allocation2 + $0x70] ss:$8 sps:$4 sm:$0xff]   ;;  %vm3771_vm4 = vmpackc.low %vm349_vm3, %vm349_vm3  ;;  %s3573_s12 = smov 64  }
  0x56   : > { %950 = vmatprep.subr.bf16.mxu0 %v3139_v4  ;;  %s3748_s23 = scalar_lea.vmem %s4168_s0, %s3041_s20  ;;  %v3157_v20 = vld [vmem:[#allocation2 + $0x84] ss:$8 sps:$4 sm:$0xff]   ;;  %v3159_v21 = vld [vmem:[#allocation2 + $0x80] ss:$8 sps:$4 sm:$0xff]   ;;  %v3160_v22 = vld [vmem:[#allocation2 + $0x94] ss:$8 sps:$4 sm:$0xff]  }
  0x57   : > { %v3751_v13 = vld [vmem:[%s3748_s23 + $0x8] sm:$0xff]  ;;  %v3162_v23 = vld [vmem:[#allocation2 + $0x90] ss:$8 sps:$4 sm:$0xff]   ;;  %v3166_v26 = vld [vmem:[#allocation2 + $0xb4] ss:$8 sps:$4 sm:$0xff]   ;;  %vm1874_vm5 = vcmask 261120  }
  0x58   : > { %v339_v14 = vrot.slane %v3751_v13, 7  ;;  %v3163_v24 = vld [vmem:[#allocation2 + $0xa4] ss:$8 sps:$4 sm:$0xff]   ;;  %v3165_v25 = vld [vmem:[#allocation2 + $0xa0] ss:$8 sps:$4 sm:$0xff]   ;;  %v355_v41 = vpack.c.bf16 %v3751_v13, %v3751_v13  ;;  %vm2454_vm6 = vcmask 1041409  }
  0x59   : > { %951 = vmatpush1.bf16.msra.mxu0 %v3141_v5  ;;  %v3168_v27 = vld [vmem:[#allocation2 + $0xb0] ss:$8 sps:$4 sm:$0xff]   ;;  %v3169_v28 = vld [vmem:[#allocation2 + $0xc4] ss:$8 sps:$4 sm:$0xff]   ;;  %v3171_v29 = vld [vmem:[#allocation2 + $0xc0] ss:$8 sps:$4 sm:$0xff]  }
  0x5a   : > { %952 = vmatprep.subr.bf16.mxu0 %v3142_v6  ;;  %v2905_v18 = vpack.c.bf16 %v339_v14, %v339_v14  ;;  %v3172_v30 = vld [vmem:[#allocation2 + $0xd4] ss:$8 sps:$4 sm:$0xff]   ;;  %v3174_v31 = vld [vmem:[#allocation2 + $0xd0] ss:$8 sps:$4 sm:$0xff]   ;;  %v3175_v32 = vld [vmem:[#allocation2 + $0xe4] ss:$8 sps:$4 sm:$0xff]  }
  0x5b   : > { %v3177_v33 = vld [vmem:[#allocation2 + $0xe0] ss:$8 sps:$4 sm:$0xff]   ;;  %v3178_v35 = vld [vmem:[#allocation2 + $0xf4] ss:$8 sps:$4 sm:$0xff]   ;;  %v3180_v37 = vld [vmem:[#allocation2 + $0xf0] ss:$8 sps:$4 sm:$0xff]  }
  0x5c   : > { %2906 = vmatprep.mubr.msk.bf16.mxu0 %vm3754_vm2, %v2905_v18  ;;  %v3761_v34 = vld [vmem:[%s3748_s23] sm:$0xff]  ;;  %v3186_v42 = vld [vmem:[#allocation2 + $0x114] ss:$8 sps:$4 sm:$0xff]   ;;  %v3184_v45 = vld [vmem:[#allocation2 + $0x110] ss:$8 sps:$4 sm:$0xff]   ;;  %vm2456_vm7 = vcmask 1042434  }
  0x5d   : > { %953 = vmatpush1.bf16.msra.mxu0 %v3144_v7  ;;  %v338_v36 = vrot.slane %v3761_v34, 7  ;;  %v3183_v38 = vld [vmem:[#allocation2 + $0x104] ss:$8 sps:$4 sm:$0xff]   ;;  %v3181_v40 = vld [vmem:[#allocation2 + $0x100] ss:$8 sps:$4 sm:$0xff]   ;;  %vm2458_vm8 = vcmask 1043459  }
  0x5e   : > { %954 = vmatprep.subr.bf16.mxu0 %v3145_v8  ;;  %v3277_v43 = vld [vmem:[#allocation5 + $0x4] ss:$8 sps:$4 sm:$0xff]   ;;  %v3279_v44 = vld [vmem:[#allocation5] ss:$8 sps:$4 sm:$0xff]   ;;  %v3280_v46 = vld [vmem:[#allocation5 + $0x14] ss:$8 sps:$4 sm:$0xff]  }
  0x5f   : > { %v2910_v39 = vpack.c.bf16 %v338_v36, %v338_v36  ;;  %v3189_v47 = vld [vmem:[#allocation2 + $0x124] ss:$8 sps:$4 sm:$0xff]   ;;  %1667 = vmatprep.subr.bf16.mxu1 %v3277_v43  ;;  %v3282_v48 = vld [vmem:[#allocation5 + $0x10] ss:$8 sps:$4 sm:$0xff]   ;;  %v3187_v50 = vld [vmem:[#allocation2 + $0x120] ss:$8 sps:$4 sm:$0xff]  }
  0x60   : > { %1668 = vmatpush1.bf16.msra.mxu1 %v3279_v44  ;;  %v3283_v49 = vld [vmem:[#allocation5 + $0x24] ss:$8 sps:$4 sm:$0xff]   ;;  %v3192_v51 = vld [vmem:[#allocation2 + $0x134] ss:$8 sps:$4 sm:$0xff]   ;;  %v3285_v52 = vld [vmem:[#allocation5 + $0x20] ss:$8 sps:$4 sm:$0xff]  }
  0x61   : > { %955 = vmatpush1.bf16.msra.mxu0 %v3147_v9  ;;  %1669 = vmatprep.subr.bf16.mxu1 %v3280_v46  ;;  %v3286_v53 = vld [vmem:[#allocation5 + $0x34] ss:$8 sps:$4 sm:$0xff]   ;;  %v3190_v54 = vld [vmem:[#allocation2 + $0x130] ss:$8 sps:$4 sm:$0xff]   ;;  %v3195_v55 = vld [vmem:[#allocation2 + $0x144] ss:$8 sps:$4 sm:$0xff]  }
  0x62   : > { %956 = vmatprep.subr.bf16.mxu0 %v3148_v10  ;;  %v3288_v56 = vld [vmem:[#allocation5 + $0x30] ss:$8 sps:$4 sm:$0xff]   ;;  %v3289_v57 = vld [vmem:[#allocation5 + $0x44] ss:$8 sps:$4 sm:$0xff]   ;;  %v3193_v58 = vld [vmem:[#allocation2 + $0x140] ss:$8 sps:$4 sm:$0xff]  }
  0x63   : > { %v3198_v59 = vld [vmem:[#allocation2 + $0x154] ss:$8 sps:$4 sm:$0xff]   ;;  %v3291_v60 = vld [vmem:[#allocation5 + $0x40] ss:$8 sps:$4 sm:$0xff]   ;;  %v3196_v62 = vld [vmem:[#allocation2 + $0x150] ss:$8 sps:$4 sm:$0xff]  }
  0x64   : > { %1670 = vmatpush1.bf16.msra.mxu1 %v3282_v48  ;;  %v3292_v61 = vld [vmem:[#allocation5 + $0x54] ss:$8 sps:$4 sm:$0xff]   ;;  %v3201_v63 = vld [vmem:[#allocation2 + $0x164] ss:$8 sps:$4 sm:$0xff]   ;;  %v3294_v0 = vld [vmem:[#allocation5 + $0x50] ss:$8 sps:$4 sm:$0xff]  }
  0x65   : > { %957 = vmatpush1.bf16.msra.mxu0 %v3150_v11  ;;  %1671 = vmatprep.subr.bf16.mxu1 %v3283_v49  ;;  %v3295_v1 = vld [vmem:[#allocation5 + $0x64] ss:$8 sps:$4 sm:$0xff]   ;;  %v3199_v2 = vld [vmem:[#allocation2 + $0x160] ss:$8 sps:$4 sm:$0xff]   ;;  %v3204_v3 = vld [vmem:[#allocation2 + $0x174] ss:$8 sps:$4 sm:$0xff]  }
  0x66   : > { %958 = vmatprep.subr.bf16.mxu0 %v3151_v12  ;;  %v3297_v4 = vld [vmem:[#allocation5 + $0x60] ss:$8 sps:$4 sm:$0xff]   ;;  %v3298_v5 = vld [vmem:[#allocation5 + $0x74] ss:$8 sps:$4 sm:$0xff]   ;;  %v3202_v6 = vld [vmem:[#allocation2 + $0x170] ss:$8 sps:$4 sm:$0xff]  }
  0x67   : > { %v3207_v7 = vld [vmem:[#allocation2 + $0x184] ss:$8 sps:$4 sm:$0xff]   ;;  %v3300_v8 = vld [vmem:[#allocation5 + $0x70] ss:$8 sps:$4 sm:$0xff]   ;;  %v3205_v10 = vld [vmem:[#allocation2 + $0x180] ss:$8 sps:$4 sm:$0xff]  }
  0x68   : > { %1672 = vmatpush1.bf16.msra.mxu1 %v3285_v52  ;;  %v3301_v9 = vld [vmem:[#allocation5 + $0x84] ss:$8 sps:$4 sm:$0xff]   ;;  %v3210_v11 = vld [vmem:[#allocation2 + $0x194] ss:$8 sps:$4 sm:$0xff]   ;;  %v3303_v12 = vld [vmem:[#allocation5 + $0x80] ss:$8 sps:$4 sm:$0xff]  }
  0x69   : > { %959 = vmatpush1.bf16.msra.mxu0 %v3153_v16  ;;  %1673 = vmatprep.subr.bf16.mxu1 %v3286_v53  ;;  %v3304_v14 = vld [vmem:[#allocation5 + $0x94] ss:$8 sps:$4 sm:$0xff]   ;;  %v3208_v16 = vld [vmem:[#allocation2 + $0x190] ss:$8 sps:$4 sm:$0xff]   ;;  %v3223_v36 = vld [vmem:[#allocation2 + $0x1e0] ss:$8 sps:$4 sm:$0xff]  }
  0x6a   : > { %960 = vmatprep.subr.bf16.mxu0 %v3154_v17  ;;  %v3213_v17 = vld [vmem:[#allocation2 + $0x1a4] ss:$8 sps:$4 sm:$0xff]   ;;  %v3306_v18 = vld [vmem:[#allocation5 + $0x90] ss:$8 sps:$4 sm:$0xff]   ;;  %v3234_v44 = vld [vmem:[#allocation2 + $0x214] ss:$8 sps:$4 sm:$0xff]  }
  0x6b   : > { %v3232_v46 = vld [vmem:[#allocation2 + $0x210] ss:$8 sps:$4 sm:$0xff]   ;;  %v3240_v48 = vld [vmem:[#allocation2 + $0x234] ss:$8 sps:$4 sm:$0xff]   ;;  %vm2460_vm9 = vcmask 1044484   ;;  %vm2462_vm10 = vcmask 1045509  }
  0x6c   : > { %1674 = vmatpush1.bf16.msra.mxu1 %v3288_v56  ;;  %v3238_v49 = vld [vmem:[#allocation2 + $0x230] ss:$8 sps:$4 sm:$0xff]   ;;  %v3246_v52 = vld [vmem:[#allocation2 + $0x254] ss:$8 sps:$4 sm:$0xff]   ;;  %vm2464_vm11 = vcmask 1046534   ;;  %vm2466_vm12 = vcmask 1047559  }
  0x6d   : > { %961 = vmatpush1.bf16.msra.mxu0 %v3156_v19  ;;  %1675 = vmatprep.subr.bf16.mxu1 %v3289_v57  ;;  %v3307_v19 = vld [vmem:[#allocation5 + $0xa4] ss:$8 sps:$4 sm:$0xff]   ;;  %v3244_v53 = vld [vmem:[#allocation2 + $0x250] ss:$8 sps:$4 sm:$0xff]   ;;  %v3252_v56 = vld [vmem:[#allocation2 + $0x274] ss:$8 sps:$4 sm:$0xff]  }
  0x6e   : > { %962 = vmatprep.subr.bf16.mxu0 %v3157_v20  ;;  %v3211_v20 = vld [vmem:[#allocation2 + $0x1a0] ss:$8 sps:$4 sm:$0xff]   ;;  %v3250_v57 = vld [vmem:[#allocation2 + $0x270] ss:$8 sps:$4 sm:$0xff]   ;;  %vm2493_vm13 = vcmask 64512   ;;  %vm2584_vm14 = vcmask 130112  }
  0x6f   : > { %v3340_v15 = vld [vmem:[#allocation5 + $0x150] ss:$8 sps:$4 sm:$0xff]   ;;  %vm2611_vm15 = vcmask 392512   ;;  %vm2638_vm0 = vcmask 654912   ;;  %vm2665_vm1 = vcmask 917312   ;;  %vm2598_vm3 = vcmask 261312  }
  0x70   : > { %1676 = vmatpush1.bf16.msra.mxu1 %v3291_v60  ;;  %v3258_v60 = vld [vmem:[#allocation2 + $0x294] ss:$8 sps:$4 sm:$0xff]   ;;  %s326_s13 = sand.u32 1, %s3557_s28   ;;  %s3042_s19 = sshll.u32 %s3644_s9, 8 }
  0x71   : > { %963 = vmatpush1.bf16.msra.mxu0 %v3159_v21  ;;  %1677 = vmatprep.subr.bf16.mxu1 %v3292_v61  ;;  %v3216_v21 = vld [vmem:[#allocation2 + $0x1b4] ss:$8 sps:$4 sm:$0xff]   ;;  %v3256_v61 = vld [vmem:[#allocation2 + $0x290] ss:$8 sps:$4 sm:$0xff]   ;;  %s2803_s18 = sshll.u32 %s326_s13, 4  ;;  %s4124_s22 = scalar_lea.hbm %s4176_s8, %s3042_s19 }
  0x72   : > { %964 = vmatprep.subr.bf16.mxu0 %v3160_v22  ;;  %v3309_v22 = vld [vmem:[#allocation5 + $0xa0] ss:$8 sps:$4 sm:$0xff]   ;;  %s328_s29 = scalar_lea.vmem [#allocation7], %s2803_s18  ;;  %s2700_s9 = scalar_lea.sflag [#allocation4], %s326_s13 }
  0x73   : > { %s2714_s14 = sshll.u32 %s328_s29, 4  ;;  %p4196_p1 = scmp.ne.s32.totalorder %s4183_s15, 0  ;;  %s4126_s14 = int_to_ptr.vmem [resolvable:$true] %s2714_s14 }
  0x74   : > { %1678 = vmatpush1.bf16.msra.mxu1 %v3294_v0  ;;  %v3264_v0 = vld [vmem:[#allocation2 + $0x2b4] ss:$8 sps:$4 sm:$0xff]   ;;  %s3495_s21 = scalar_lea.vmem %s4126_s14, 256 }
  0x75   : > { %965 = vmatpush1.bf16.msra.mxu0 %v3162_v23  ;;  %1679 = vmatprep.subr.bf16.mxu1 %v3295_v1  ;;  %v3310_v23 = vld [vmem:[#allocation5 + $0xb4] ss:$8 sps:$4 sm:$0xff]   ;;  %v3262_v1 = vld [vmem:[#allocation2 + $0x2b0] ss:$8 sps:$4 sm:$0xff]   ;;  %p3496_p10 = scmp.ne.s32.totalorder %s4126_s14, %s3495_s21 }
  0x76   : > { %966 = vmatprep.subr.bf16.mxu0 %v3163_v24  ;;  %v3214_v24 = vld [vmem:[#allocation2 + $0x1b0] ss:$8 sps:$4 sm:$0xff]  }
  0x77   : > { %p3497_p2 = pnand %p3496_p10, %p4196_p1 }
  0x78   : > { %1680 = vmatpush1.bf16.msra.mxu1 %v3297_v4  ;;  %v3270_v4 = vld [vmem:[#allocation2 + $0x2d4] ss:$8 sps:$4 sm:$0xff]  }
  0x79   : > { %967 = vmatpush1.bf16.msra.mxu0 %v3165_v25  ;;  %1681 = vmatprep.subr.bf16.mxu1 %v3298_v5  ;;  %v3219_v25 = vld [vmem:[#allocation2 + $0x1c4] ss:$8 sps:$4 sm:$0xff]   ;;  %v3268_v5 = vld [vmem:[#allocation2 + $0x2d0] ss:$8 sps:$4 sm:$0xff]   ;;  %p3498_p3 = pneg %p3497_p2 }
  0x7a   : > { %968 = vmatprep.subr.bf16.mxu0 %v3166_v26  ;;  %v3312_v26 = vld [vmem:[#allocation5 + $0xb0] ss:$8 sps:$4 sm:$0xff]  }
  0x7c   : > { %1682 = vmatpush1.bf16.msra.mxu1 %v3300_v8  ;;  %v3276_v8 = vld [vmem:[#allocation2 + $0x2f4] ss:$8 sps:$4 sm:$0xff]  }
  0x7d   : > { %969 = vmatpush1.bf16.msra.mxu0 %v3168_v27  ;;  %1683 = vmatprep.subr.bf16.mxu1 %v3301_v9  ;;  %v3313_v27 = vld [vmem:[#allocation5 + $0xc4] ss:$8 sps:$4 sm:$0xff]   ;;  %v345_v9 = vrot.slane %v3761_v34, 1 }
  0x7e   : > { %970 = vmatprep.subr.bf16.mxu0 %v3169_v28  ;;  %v3217_v28 = vld [vmem:[#allocation2 + $0x1c0] ss:$8 sps:$4 sm:$0xff]  }
  0x80   : > { %1684 = vmatpush1.bf16.msra.mxu1 %v3303_v12  ;;  %v3319_v12 = vld [vmem:[#allocation5 + $0xe4] ss:$8 sps:$4 sm:$0xff]  }
  0x81   : > { %971 = vmatpush1.bf16.msra.mxu0 %v3171_v29  ;;  %1685 = vmatprep.subr.bf16.mxu1 %v3304_v14  ;;  %v3222_v29 = vld [vmem:[#allocation2 + $0x1d4] ss:$8 sps:$4 sm:$0xff]   ;;  %v3321_v14 = vld [vmem:[#allocation5 + $0xe0] ss:$8 sps:$4 sm:$0xff]  }
  0x82   : > { %972 = vmatprep.subr.bf16.mxu0 %v3172_v30  ;;  %v3315_v30 = vld [vmem:[#allocation5 + $0xc0] ss:$8 sps:$4 sm:$0xff]  }
  0x84   : > { %1686 = vmatpush1.bf16.msra.mxu1 %v3306_v18  ;;  %v3327_v18 = vld [vmem:[#allocation5 + $0x104] ss:$8 sps:$4 sm:$0xff]  }
  0x85   : > { %973 = vmatpush1.bf16.msra.mxu0 %v3174_v31  ;;  %1687 = vmatprep.subr.bf16.mxu1 %v3307_v19  ;;  %v3316_v31 = vld [vmem:[#allocation5 + $0xd4] ss:$8 sps:$4 sm:$0xff]   ;;  %v456_v19 = vlaneseq }
  0x86   : > { %974 = vmatprep.subr.bf16.mxu0 %v3175_v32  ;;  %v3220_v32 = vld [vmem:[#allocation2 + $0x1d0] ss:$8 sps:$4 sm:$0xff]  }
  0x88   : > { %1688 = vmatpush1.bf16.msra.mxu1 %v3309_v22 }
  0x89   : > { %975 = vmatpush1.bf16.msra.mxu0 %v3177_v33  ;;  %1689 = vmatprep.subr.bf16.mxu1 %v3310_v23  ;;  %v3225_v33 = vld [vmem:[#allocation2 + $0x1e4] ss:$8 sps:$4 sm:$0xff]  }
  0x8a   : > { %976 = vmatprep.subr.bf16.mxu0 %v3178_v35  ;;  %v3318_v35 = vld [vmem:[#allocation5 + $0xd0] ss:$8 sps:$4 sm:$0xff]  }
  0x8c   : > { %1690 = vmatpush1.bf16.msra.mxu1 %v3312_v26 }
  0x8d   : > { %977 = vmatpush1.bf16.msra.mxu0 %v3180_v37  ;;  %1691 = vmatprep.subr.bf16.mxu1 %v3313_v27  ;;  %v3228_v37 = vld [vmem:[#allocation2 + $0x1f4] ss:$8 sps:$4 sm:$0xff]  }
  0x8e   : > { %987 = vmatprep.subr.bf16.mxu0 %v3183_v38  ;;  %v3226_v38 = vld [vmem:[#allocation2 + $0x1f0] ss:$8 sps:$4 sm:$0xff]  }
  0x90   : > { %2911 = vmatmul.mubr.msk.bf16.vlgmr.msra.gmra.mrb[0].mxu0 %vm3754_vm2, %v2910_v39  ;;  %1692 = vmatpush1.bf16.msra.mxu1 %v3315_v30  ;;  %v346_v39 = vrot.slane %v3751_v13, 1  ;;  %v3237_v13 = vld [vmem:[#allocation2 + $0x224] ss:$8 sps:$4 sm:$0xff]  }
  0x91   : > { %988 = vmatpush1.bf16.msra.mxu0 %v3181_v40  ;;  %1019 = vmatprep.mubr.bf16.mxu0 %v355_v41  ;;  %v3231_v40 = vld [vmem:[#allocation2 + $0x204] ss:$8 sps:$4 sm:$0xff]   ;;  %v354_v41 = vpack.c.bf16 %v3761_v34, %v3761_v34  ;;  %v3781_v34 = vshrl.u32 %v456_v19, 7 }
  0x92   : > { %989 = vmatprep.subr.bf16.mxu0 %v3186_v42  ;;  %1693 = vmatprep.subr.bf16.mxu1 %v3316_v31  ;;  %v3229_v42 = vld [vmem:[#allocation2 + $0x200] ss:$8 sps:$4 sm:$0xff]   ;;  %v2913_v43 = vpack.c.bf16 %v346_v39, %v346_v39  ;;  %v3330_v39 = vld [vmem:[#allocation5 + $0x114] ss:$8 sps:$4 sm:$0xff]  }
  0x93   : > { %v3790_v22 = vsub.s32 1, %v3781_v34 }
  0x94   : > { %1694 = vmatpush1.bf16.msra.mxu1 %v3318_v35 }
  0x95   : > { %990 = vmatpush1.bf16.msra.mxu0 %v3184_v45  ;;  %1695 = vmatprep.subr.bf16.mxu1 %v3319_v12  ;;  %v3381_v12 = vld [vmem:[#allocation5 + $0x224] ss:$8 sps:$4 sm:$0xff]  }
  0x96   : > { %991 = vmatprep.subr.bf16.mxu0 %v3189_v47  ;;  %v3235_v47 = vld [vmem:[#allocation2 + $0x220] ss:$8 sps:$4 sm:$0xff]  }
  0x98   : > { %1696 = vmatpush1.bf16.msra.mxu1 %v3321_v14  ;;  %v3379_v14 = vld [vmem:[#allocation5 + $0x220] ss:$8 sps:$4 sm:$0xff]  }
  0x99   : > { %992 = vmatpush1.bf16.msra.mxu0 %v3187_v50  ;;  %v3243_v50 = vld [vmem:[#allocation2 + $0x244] ss:$8 sps:$4 sm:$0xff]  }
  0x9a   : > { %993 = vmatprep.subr.bf16.mxu0 %v3192_v51  ;;  %v3241_v51 = vld [vmem:[#allocation2 + $0x240] ss:$8 sps:$4 sm:$0xff]  }
  0x9d   : > { %994 = vmatpush1.bf16.msra.mxu0 %v3190_v54  ;;  %v3249_v54 = vld [vmem:[#allocation2 + $0x264] ss:$8 sps:$4 sm:$0xff]  }
  0x9e   : > { %995 = vmatprep.subr.bf16.mxu0 %v3195_v55  ;;  %v3247_v55 = vld [vmem:[#allocation2 + $0x260] ss:$8 sps:$4 sm:$0xff]  }
  0xa1   : > { %996 = vmatpush1.bf16.msra.mxu0 %v3193_v58  ;;  %v3255_v58 = vld [vmem:[#allocation2 + $0x284] ss:$8 sps:$4 sm:$0xff]  }
  0xa2   : > { %997 = vmatprep.subr.bf16.mxu0 %v3198_v59  ;;  %v3253_v59 = vld [vmem:[#allocation2 + $0x280] ss:$8 sps:$4 sm:$0xff]  }
  0xa5   : > { %998 = vmatpush1.bf16.msra.mxu0 %v3196_v62  ;;  %v3261_v62 = vld [vmem:[#allocation2 + $0x2a4] ss:$8 sps:$4 sm:$0xff]  }
  0xa6   : > { %999 = vmatprep.subr.bf16.mxu0 %v3201_v63  ;;  %v3259_v63 = vld [vmem:[#allocation2 + $0x2a0] ss:$8 sps:$4 sm:$0xff]  }
  0xa9   : > { %1000 = vmatpush1.bf16.msra.mxu0 %v3199_v2  ;;  %v3267_v2 = vld [vmem:[#allocation2 + $0x2c4] ss:$8 sps:$4 sm:$0xff]  }
  0xaa   : > { %1001 = vmatprep.subr.bf16.mxu0 %v3204_v3  ;;  %v3265_v3 = vld [vmem:[#allocation2 + $0x2c0] ss:$8 sps:$4 sm:$0xff]  }
  0xad   : > { %1002 = vmatpush1.bf16.msra.mxu0 %v3202_v6  ;;  %v3273_v6 = vld [vmem:[#allocation2 + $0x2e4] ss:$8 sps:$4 sm:$0xff]  }
  0xae   : > { %1003 = vmatprep.subr.bf16.mxu0 %v3207_v7  ;;  %v3271_v7 = vld [vmem:[#allocation2 + $0x2e0] ss:$8 sps:$4 sm:$0xff]  }
  0xb1   : > { %1004 = vmatpush1.bf16.msra.mxu0 %v3205_v10  ;;  %v3274_v10 = vld [vmem:[#allocation2 + $0x2f0] ss:$8 sps:$4 sm:$0xff]  }
  0xb2   : > { %1005 = vmatprep.subr.bf16.mxu0 %v3210_v11  ;;  %v2916_v11 = vpack.c.bf16 %v345_v9, %v345_v9  ;;  %v3378_v9 = vld [vmem:[#allocation5 + $0x214] ss:$8 sps:$4 sm:$0xff]  }
  0xb5   : > { %1006 = vmatpush1.bf16.msra.mxu0 %v3208_v16  ;;  %v3322_v16 = vld [vmem:[#allocation5 + $0xf4] ss:$8 sps:$4 sm:$0xff]  }
  0xb6   : > { %1007 = vmatprep.subr.bf16.mxu0 %v3213_v17  ;;  %v3324_v17 = vld [vmem:[#allocation5 + $0xf0] ss:$8 sps:$4 sm:$0xff]   ;;  %1697 = vmatprep.subr.bf16.mxu1 %v3322_v16  ;;  %v3384_v16 = vld [vmem:[#allocation5 + $0x234] ss:$8 sps:$4 sm:$0xff]  }
  0xb7   : > { %1698 = vmatpush1.bf16.msra.mxu1 %v3324_v17  ;;  %v3382_v17 = vld [vmem:[#allocation5 + $0x230] ss:$8 sps:$4 sm:$0xff]  }
  0xb8   : > { %1708 = vmatprep.subr.bf16.mxu1 %v3327_v18  ;;  %v3387_v18 = vld [vmem:[#allocation5 + $0x244] ss:$8 sps:$4 sm:$0xff]  }
  0xb9   : > { %1008 = vmatpush1.bf16.msra.mxu0 %v3211_v20  ;;  %v3784_v20 = vsub.s32 0, %v3781_v34 }
  0xba   : > { %1009 = vmatprep.subr.bf16.mxu0 %v3216_v21  ;;  %v454_v21 = vld [vmem:[%s4171_s3] sm:$0x3] }
  0xbb   : > { %v3793_v23 = vrot.slane %v454_v21, %v3784_v20 }
  0xbd   : > { %1010 = vmatpush1.bf16.msra.mxu0 %v3214_v24  ;;  %v3796_v24 = vrot.slane %v454_v21, %v3790_v22  ;;  %v3385_v21 = vld [vmem:[#allocation5 + $0x240] ss:$8 sps:$4 sm:$0xff]  }
  0xbe   : > { %1011 = vmatprep.subr.bf16.mxu0 %v3219_v25 }
  0xc1   : > { %1012 = vmatpush1.bf16.msra.mxu0 %v3217_v28 }
  0xc2   : > { %1013 = vmatprep.subr.bf16.mxu0 %v3222_v29 }
  0xc5   : > { %1014 = vmatpush1.bf16.msra.mxu0 %v3220_v32 }
  0xc6   : > { %1015 = vmatprep.subr.bf16.mxu0 %v3225_v33 }
  0xc9   : > { %1016 = vmatpush1.bf16.msra.mxu0 %v3223_v36 }
  0xca   : > { %1017 = vmatprep.subr.bf16.mxu0 %v3228_v37  ;;  %v3325_v37 = vld [vmem:[#allocation5 + $0x100] ss:$8 sps:$4 sm:$0xff]  }
  0xcd   : > { %1018 = vmatpush1.bf16.msra.mxu0 %v3226_v38 }
  0xce   : > { %1028 = vmatprep.subr.bf16.mxu0 %v3231_v40 }
  0xd0   : > { %1020 = vmatmul.mubr.bf16.vlgmr.msra.gmra.mrb[0].mxu0 %v354_v41  ;;  %v3328_v41 = vld [vmem:[#allocation5 + $0x110] ss:$8 sps:$4 sm:$0xff]  }
  0xd1   : > { %1029 = vmatpush1.bf16.msra.mxu0 %v3229_v42  ;;  %2914 = vmatprep.mubr.msk.bf16.mxu0 %vm3771_vm4, %v2913_v43  ;;  %v3333_v42 = vld [vmem:[#allocation5 + $0x124] ss:$8 sps:$4 sm:$0xff]   ;;  %v3331_v43 = vld [vmem:[#allocation5 + $0x120] ss:$8 sps:$4 sm:$0xff]  }
  0xd2   : > { %1030 = vmatprep.subr.bf16.mxu0 %v3234_v44  ;;  %v3336_v44 = vld [vmem:[#allocation5 + $0x134] ss:$8 sps:$4 sm:$0xff]  }
  0xd5   : > { %1031 = vmatpush1.bf16.msra.mxu0 %v3232_v46  ;;  %v3334_v46 = vld [vmem:[#allocation5 + $0x130] ss:$8 sps:$4 sm:$0xff]  }
  0xd6   : > { %1032 = vmatprep.subr.bf16.mxu0 %v3237_v13  ;;  %v3339_v13 = vld [vmem:[#allocation5 + $0x144] ss:$8 sps:$4 sm:$0xff]  }
  0xd9   : > { %1033 = vmatpush1.bf16.msra.mxu0 %v3235_v47  ;;  %v3337_v47 = vld [vmem:[#allocation5 + $0x140] ss:$8 sps:$4 sm:$0xff]  }
  0xda   : > { %1034 = vmatprep.subr.bf16.mxu0 %v3240_v48  ;;  %v3342_v48 = vld [vmem:[#allocation5 + $0x154] ss:$8 sps:$4 sm:$0xff]  }
  0xdd   : > { %1035 = vmatpush1.bf16.msra.mxu0 %v3238_v49  ;;  %v3345_v49 = vld [vmem:[#allocation5 + $0x164] ss:$8 sps:$4 sm:$0xff]  }
  0xde   : > { %1036 = vmatprep.subr.bf16.mxu0 %v3243_v50  ;;  %v3343_v50 = vld [vmem:[#allocation5 + $0x160] ss:$8 sps:$4 sm:$0xff]  }
  0xe1   : > { %1037 = vmatpush1.bf16.msra.mxu0 %v3241_v51  ;;  %v3348_v51 = vld [vmem:[#allocation5 + $0x174] ss:$8 sps:$4 sm:$0xff]  }
  0xe2   : > { %1038 = vmatprep.subr.bf16.mxu0 %v3246_v52  ;;  %v3346_v52 = vld [vmem:[#allocation5 + $0x170] ss:$8 sps:$4 sm:$0xff]  }
  0xe5   : > { %1039 = vmatpush1.bf16.msra.mxu0 %v3244_v53  ;;  %v3351_v53 = vld [vmem:[#allocation5 + $0x184] ss:$8 sps:$4 sm:$0xff]  }
  0xe6   : > { %1040 = vmatprep.subr.bf16.mxu0 %v3249_v54  ;;  %v3349_v54 = vld [vmem:[#allocation5 + $0x180] ss:$8 sps:$4 sm:$0xff]  }
  0xe9   : > { %1041 = vmatpush1.bf16.msra.mxu0 %v3247_v55  ;;  %v3354_v55 = vld [vmem:[#allocation5 + $0x194] ss:$8 sps:$4 sm:$0xff]  }
  0xea   : > { %1042 = vmatprep.subr.bf16.mxu0 %v3252_v56  ;;  %v3352_v56 = vld [vmem:[#allocation5 + $0x190] ss:$8 sps:$4 sm:$0xff]  }
  0xed   : > { %1043 = vmatpush1.bf16.msra.mxu0 %v3250_v57  ;;  %v3357_v57 = vld [vmem:[#allocation5 + $0x1a4] ss:$8 sps:$4 sm:$0xff]  }
  0xee   : > { %1044 = vmatprep.subr.bf16.mxu0 %v3255_v58  ;;  %v3355_v58 = vld [vmem:[#allocation5 + $0x1a0] ss:$8 sps:$4 sm:$0xff]  }
  0xf1   : > { %1045 = vmatpush1.bf16.msra.mxu0 %v3253_v59  ;;  %v3360_v59 = vld [vmem:[#allocation5 + $0x1b4] ss:$8 sps:$4 sm:$0xff]  }
  0xf2   : > { %1046 = vmatprep.subr.bf16.mxu0 %v3258_v60  ;;  %v3358_v60 = vld [vmem:[#allocation5 + $0x1b0] ss:$8 sps:$4 sm:$0xff]  }
  0xf5   : > { %1047 = vmatpush1.bf16.msra.mxu0 %v3256_v61  ;;  %v3363_v61 = vld [vmem:[#allocation5 + $0x1c4] ss:$8 sps:$4 sm:$0xff]  }
  0xf6   : > { %1048 = vmatprep.subr.bf16.mxu0 %v3261_v62  ;;  %v3361_v62 = vld [vmem:[#allocation5 + $0x1c0] ss:$8 sps:$4 sm:$0xff]  }
  0xf9   : > { %1049 = vmatpush1.bf16.msra.mxu0 %v3259_v63  ;;  %v3366_v63 = vld [vmem:[#allocation5 + $0x1d4] ss:$8 sps:$4 sm:$0xff]  }
  0xfa   : > { %1050 = vmatprep.subr.bf16.mxu0 %v3264_v0  ;;  %v3364_v0 = vld [vmem:[#allocation5 + $0x1d0] ss:$8 sps:$4 sm:$0xff]  }
  0xfd   : > { %1051 = vmatpush1.bf16.msra.mxu0 %v3262_v1  ;;  %v3369_v1 = vld [vmem:[#allocation5 + $0x1e4] ss:$8 sps:$4 sm:$0xff]  }
  0xfe   : > { %1052 = vmatprep.subr.bf16.mxu0 %v3267_v2  ;;  %v3367_v2 = vld [vmem:[#allocation5 + $0x1e0] ss:$8 sps:$4 sm:$0xff]  }
 0x101   : > { %1053 = vmatpush1.bf16.msra.mxu0 %v3265_v3  ;;  %v3372_v3 = vld [vmem:[#allocation5 + $0x1f4] ss:$8 sps:$4 sm:$0xff]  }
 0x102   : > { %1054 = vmatprep.subr.bf16.mxu0 %v3270_v4  ;;  %v3370_v4 = vld [vmem:[#allocation5 + $0x1f0] ss:$8 sps:$4 sm:$0xff]  }
 0x105   : > { %1055 = vmatpush1.bf16.msra.mxu0 %v3268_v5  ;;  %v3375_v5 = vld [vmem:[#allocation5 + $0x204] ss:$8 sps:$4 sm:$0xff]  }
 0x106   : > { %1056 = vmatprep.subr.bf16.mxu0 %v3273_v6 }
 0x109   : > { %1057 = vmatpush1.bf16.msra.mxu0 %v3271_v7  ;;  %v3373_v7 = vld [vmem:[#allocation5 + $0x200] ss:$8 sps:$4 sm:$0xff]  }
 0x10a   : > { %1058 = vmatprep.subr.bf16.mxu0 %v3276_v8 }
 0x10d   : > { %1059 = vmatpush1.bf16.msra.mxu0 %v3274_v10 }
 0x110   : > { %2917 = vmatmul.mubr.msk.bf16.vlgmr.msra.gmra.mrb[0].mxu0 %vm3771_vm4, %v2916_v11  ;;  %v3376_v11 = vld [vmem:[#allocation5 + $0x210] ss:$8 sps:$4 sm:$0xff]  }
 0x1e3   : > { %v1062_v25 = vpop.f32.mrb[0].mxu0 }
 0x1e4   : > { %v3043_v26 = vadd.f32 %v1062_v25, %v3793_v23  ;;  %v1064_v27 = vpop.f32.mrb[1].mxu0  ;;  %v3390_v25 = vld [vmem:[#allocation5 + $0x254] ss:$8 sps:$4 sm:$0xff]  }
 0x1e5   : > { %v3044_v28 = vadd.f32 %v1064_v27, %v3796_v24  ;;  %v1066_v29 = vpop.f32.mrb[2].mxu0  ;;  %v3393_v27 = vld [vmem:[#allocation5 + $0x264] ss:$8 sps:$4 sm:$0xff]  }
 0x1e6   : > { %v3800_v30 = vmax.f32 %v3043_v26, 0.0  ;;  %v1067_v31 = vpop.f32.mrb[3].mxu0  ;;  %v3388_v26 = vld [vmem:[#allocation5 + $0x250] ss:$8 sps:$4 sm:$0xff]   ;;  %v3396_v29 = vld [vmem:[#allocation5 + $0x274] ss:$8 sps:$4 sm:$0xff]  }
 0x1e7   : > { %v3802_v32 = vmax.f32 %v3044_v28, 0.0  ;;  %v3391_v28 = vld [vmem:[#allocation5 + $0x260] ss:$8 sps:$4 sm:$0xff]   ;;  %v3394_v31 = vld [vmem:[#allocation5 + $0x270] ss:$8 sps:$4 sm:$0xff]  }
 0x1e8   : > { %v1073_v33 = vrot.slane %v3800_v30, 7  ;;  %v1087_v8 = vpack.c.bf16 %v3800_v30, %v3800_v30 }
 0x1e9   : > { %v1074_v35 = vrot.slane %v3802_v32, 7  ;;  %v1088_v40 = vpack.c.bf16 %v3802_v32, %v3802_v32  ;;  %v1080_v6 = vrot.slane %v3802_v32, 1  ;;  %v3399_v32 = vld [vmem:[#allocation5 + $0x284] ss:$8 sps:$4 sm:$0xff]  }
 0x1ea   : > { %v3022_v38 = vpack.c.bf16 %v1073_v33, %v1073_v33  ;;  %v3397_v33 = vld [vmem:[#allocation5 + $0x280] ss:$8 sps:$4 sm:$0xff]  }
 0x1eb   : > { %v3017_v36 = vpack.c.bf16 %v1074_v35, %v1074_v35  ;;  %v3025_v10 = vpack.c.bf16 %v1080_v6, %v1080_v6  ;;  %v3402_v35 = vld [vmem:[#allocation5 + $0x294] ss:$8 sps:$4 sm:$0xff]   ;;  %v3030_v6 = vld [vmem:[%s4173_s5] ss:$0 sm:$0xff] }
 0x1ed   : > { %3018 = vmatprep.mubr.msk.bf16.mxu1 %vm3754_vm2, %v3017_v36  ;;  %v3400_v36 = vld [vmem:[#allocation5 + $0x290] ss:$8 sps:$4 sm:$0xff]  }
 0x1ee   : > { %3023 = vmatmul.mubr.msk.bf16.vlgmr.msra.gmra.mrb[0].mxu1 %vm3754_vm2, %v3022_v38  ;;  %v3403_v38 = vld [vmem:[#allocation5 + $0x2a0] ss:$8 sps:$4 sm:$0xff]   ;;  %vm2591_vm2 = vcmask 195712  }
 0x1ef   : > { %1709 = vmatpush1.bf16.msra.mxu1 %v3325_v37  ;;  %1740 = vmatprep.mubr.bf16.mxu1 %v1088_v40  ;;  %v3405_v37 = vld [vmem:[#allocation5 + $0x2a4] ss:$8 sps:$4 sm:$0xff]   ;;  %v3406_v40 = vld [vmem:[#allocation5 + $0x2b0] ss:$8 sps:$4 sm:$0xff]  }
 0x1f0   : > { %1710 = vmatprep.subr.bf16.mxu1 %v3330_v39  ;;  %v3408_v39 = vld [vmem:[#allocation5 + $0x2b4] ss:$8 sps:$4 sm:$0xff]  }
 0x1f3   : > { %1711 = vmatpush1.bf16.msra.mxu1 %v3328_v41  ;;  %v3411_v41 = vld [vmem:[#allocation5 + $0x2c4] ss:$8 sps:$4 sm:$0xff]  }
 0x1f4   : > { %1712 = vmatprep.subr.bf16.mxu1 %v3333_v42  ;;  %v3409_v42 = vld [vmem:[#allocation5 + $0x2c0] ss:$8 sps:$4 sm:$0xff]  }
 0x1f7   : > { %1713 = vmatpush1.bf16.msra.mxu1 %v3331_v43  ;;  %v3414_v43 = vld [vmem:[#allocation5 + $0x2d4] ss:$8 sps:$4 sm:$0xff]  }
 0x1f8   : > { %1714 = vmatprep.subr.bf16.mxu1 %v3336_v44  ;;  %v3412_v44 = vld [vmem:[#allocation5 + $0x2d0] ss:$8 sps:$4 sm:$0xff]  }
 0x1fb   : > { %1715 = vmatpush1.bf16.msra.mxu1 %v3334_v46  ;;  %v3417_v46 = vld [vmem:[#allocation5 + $0x2e4] ss:$8 sps:$4 sm:$0xff]  }
 0x1fc   : > { %1716 = vmatprep.subr.bf16.mxu1 %v3339_v13  ;;  %v3415_v13 = vld [vmem:[#allocation5 + $0x2e0] ss:$8 sps:$4 sm:$0xff]  }
 0x1ff   : > { %1717 = vmatpush1.bf16.msra.mxu1 %v3337_v47  ;;  %v3420_v47 = vld [vmem:[#allocation5 + $0x2f4] ss:$8 sps:$4 sm:$0xff]  }
 0x200   : > { %1718 = vmatprep.subr.bf16.mxu1 %v3342_v48  ;;  %v3418_v48 = vld [vmem:[#allocation5 + $0x2f0] ss:$8 sps:$4 sm:$0xff]  }
 0x203   : > { %1719 = vmatpush1.bf16.msra.mxu1 %v3340_v15  ;;  %v1079_v15 = vrot.slane %v3800_v30, 1 }
 0x204   : > { %1720 = vmatprep.subr.bf16.mxu1 %v3345_v49 }
 0x205   : > { %v3028_v49 = vpack.c.bf16 %v1079_v15, %v1079_v15 }
 0x207   : > { %1721 = vmatpush1.bf16.msra.mxu1 %v3343_v50 }
 0x208   : > { %1722 = vmatprep.subr.bf16.mxu1 %v3348_v51 }
 0x20b   : > { %1723 = vmatpush1.bf16.msra.mxu1 %v3346_v52 }
 0x20c   : > { %1724 = vmatprep.subr.bf16.mxu1 %v3351_v53 }
 0x20f   : > { %1725 = vmatpush1.bf16.msra.mxu1 %v3349_v54 }
 0x210   : > { %1726 = vmatprep.subr.bf16.mxu1 %v3354_v55 }
 0x213   : > { %1727 = vmatpush1.bf16.msra.mxu1 %v3352_v56 }
 0x214   : > { %1728 = vmatprep.subr.bf16.mxu1 %v3357_v57 }
 0x217   : > { %1729 = vmatpush1.bf16.msra.mxu1 %v3355_v58 }
 0x218   : > { %1730 = vmatprep.subr.bf16.mxu1 %v3360_v59 }
 0x21b   : > { %1731 = vmatpush1.bf16.msra.mxu1 %v3358_v60 }
 0x21c   : > { %1732 = vmatprep.subr.bf16.mxu1 %v3363_v61 }
 0x21f   : > { %1733 = vmatpush1.bf16.msra.mxu1 %v3361_v62 }
 0x220   : > { %1734 = vmatprep.subr.bf16.mxu1 %v3366_v63 }
 0x223   : > { %1735 = vmatpush1.bf16.msra.mxu1 %v3364_v0 }
 0x224   : > { %1736 = vmatprep.subr.bf16.mxu1 %v3369_v1 }
 0x227   : > { %1737 = vmatpush1.bf16.msra.mxu1 %v3367_v2  ;;  %v3841_v2 = vld [vmem:[%s4174_s6 + $0x10] sm:$0xff] }
 0x228   : > { %1738 = vmatprep.subr.bf16.mxu1 %v3372_v3  ;;  %v2030_v3 = vrot.slane %v3841_v2, %v3790_v22 }
 0x22b   : > { %1739 = vmatpush1.bf16.msra.mxu1 %v3370_v4  ;;  %v1938_v4 = vsub.s32 4, %v3781_v34 }
 0x22c   : > { %1749 = vmatprep.subr.bf16.mxu1 %v3375_v5  ;;  %v1901_v5 = vld [vmem:[%s4174_s6 + $0x8] sm:$0xff] }
 0x22e   : > { %1741 = vmatmul.mubr.bf16.vlgmr.msra.gmra.mrb[0].mxu1 %v1087_v8  ;;  %v1995_v8 = vrot.slane %v1901_v5, %v1938_v4 }
 0x22f   : > { %1750 = vmatpush1.bf16.msra.mxu1 %v3373_v7  ;;  %3026 = vmatprep.mubr.msk.bf16.mxu1 %vm3771_vm4, %v3025_v10  ;;  %v3857_v7 = vld [vmem:[%s4174_s6] sm:$0xff] }
 0x230   : > { %1751 = vmatprep.subr.bf16.mxu1 %v3378_v9  ;;  %v1924_v9 = vsub.s32 2, %v3781_v34  ;;  %v1911_v10 = vrot.slane %v3857_v7, %v3784_v20 }
 0x233   : > { %1752 = vmatpush1.bf16.msra.mxu1 %v3376_v11  ;;  %v3865_v11 = vld [vmem:[%s4174_s6 + $0x18] sm:$0xff] }
 0x234   : > { %1753 = vmatprep.subr.bf16.mxu1 %v3381_v12  ;;  %v2093_v12 = vrot.slane %v3865_v11, %v1924_v9 }
 0x237   : > { %1754 = vmatpush1.bf16.msra.mxu1 %v3379_v14  ;;  %v1945_v14 = vsub.s32 5, %v3781_v34 }
 0x238   : > { %1755 = vmatprep.subr.bf16.mxu1 %v3384_v16  ;;  %v1918_v16 = vrot.slane %v3857_v7, %v3790_v22 }
 0x239   : > { %v2058_v15 = vrot.slane %v3841_v2, %v1945_v14 }
 0x23b   : > { %1756 = vmatpush1.bf16.msra.mxu1 %v3382_v17  ;;  %v2002_v17 = vrot.slane %v1901_v5, %v1945_v14 }
 0x23c   : > { %1757 = vmatprep.subr.bf16.mxu1 %v3387_v18  ;;  %v1931_v18 = vsub.s32 3, %v3781_v34 }
 0x23f   : > { %1758 = vmatpush1.bf16.msra.mxu1 %v3385_v21  ;;  %v1967_v21 = vrot.slane %v1901_v5, %v3784_v20 }
 0x240   : > { %1759 = vmatprep.subr.bf16.mxu1 %v3390_v25  ;;  %v2100_v25 = vrot.slane %v3865_v11, %v1931_v18 }
 0x243   : > { %1760 = vmatpush1.bf16.msra.mxu1 %v3388_v26  ;;  %v1952_v26 = vsub.s32 6, %v3781_v34 }
 0x244   : > { %1761 = vmatprep.subr.bf16.mxu1 %v3393_v27  ;;  %v1974_v27 = vrot.slane %v1901_v5, %v3790_v22 }
 0x247   : > { %1762 = vmatpush1.bf16.msra.mxu1 %v3391_v28  ;;  %v2009_v28 = vrot.slane %v1901_v5, %v1952_v26 }
 0x248   : > { %1763 = vmatprep.subr.bf16.mxu1 %v3396_v29  ;;  %v1925_v29 = vrot.slane %v3857_v7, %v1924_v9 }
 0x24b   : > { %1764 = vmatpush1.bf16.msra.mxu1 %v3394_v31  ;;  %v2107_v31 = vrot.slane %v3865_v11, %v1938_v4 }
 0x24c   : > { %1765 = vmatprep.subr.bf16.mxu1 %v3399_v32  ;;  %v1959_v32 = vsub.s32 7, %v3781_v34 }
 0x24f   : > { %1766 = vmatpush1.bf16.msra.mxu1 %v3397_v33  ;;  %v1981_v33 = vrot.slane %v1901_v5, %v1924_v9 }
 0x250   : > { %1767 = vmatprep.subr.bf16.mxu1 %v3402_v35  ;;  %v2016_v35 = vrot.slane %v1901_v5, %v1959_v32 }
 0x253   : > { %1768 = vmatpush1.bf16.msra.mxu1 %v3400_v36  ;;  %v2023_v36 = vrot.slane %v3841_v2, %v3784_v20 }
 0x254   : > { %1769 = vmatprep.subr.bf16.mxu1 %v3405_v37  ;;  %v2114_v37 = vrot.slane %v3865_v11, %v1945_v14 }
 0x257   : > { %1770 = vmatpush1.bf16.msra.mxu1 %v3403_v38  ;;  %v1932_v38 = vrot.slane %v3857_v7, %v1931_v18 }
 0x258   : > { %1771 = vmatprep.subr.bf16.mxu1 %v3408_v39  ;;  %v2121_v39 = vrot.slane %v3865_v11, %v1952_v26 }
 0x25b   : > { %1772 = vmatpush1.bf16.msra.mxu1 %v3406_v40  ;;  %v1988_v40 = vrot.slane %v1901_v5, %v1931_v18 }
 0x25c   : > { %1773 = vmatprep.subr.bf16.mxu1 %v3411_v41  ;;  %v2037_v41 = vrot.slane %v3841_v2, %v1924_v9 }
 0x25f   : > { %1774 = vmatpush1.bf16.msra.mxu1 %v3409_v42  ;;  %v2079_v42 = vrot.slane %v3865_v11, %v3784_v20 }
 0x260   : > { %1775 = vmatprep.subr.bf16.mxu1 %v3414_v43  ;;  %v2086_v43 = vrot.slane %v3865_v11, %v3790_v22  ;;  %v1960_v22 = vrot.slane %v3857_v7, %v1959_v32 }
 0x263   : > { %1776 = vmatpush1.bf16.msra.mxu1 %v3412_v44  ;;  %v1939_v44 = vrot.slane %v3857_v7, %v1938_v4 }
 0x264   : > { %1777 = vmatprep.subr.bf16.mxu1 %v3417_v46  ;;  %v2044_v46 = vrot.slane %v3841_v2, %v1931_v18 }
 0x267   : > { %1778 = vmatpush1.bf16.msra.mxu1 %v3415_v13  ;;  %v1946_v13 = vrot.slane %v3857_v7, %v1945_v14 }
 0x268   : > { %1779 = vmatprep.subr.bf16.mxu1 %v3420_v47  ;;  %v2051_v47 = vrot.slane %v3841_v2, %v1938_v4 }
 0x26b   : > { %1780 = vmatpush1.bf16.msra.mxu1 %v3418_v48  ;;  %v1953_v48 = vrot.slane %v3857_v7, %v1952_v26 }
 0x26e   : > { %3029 = vmatmul.mubr.msk.bf16.vlgmr.msra.gmra.mrb[0].mxu1 %vm3771_vm4, %v3028_v49  ;;  %v2065_v49 = vrot.slane %v3841_v2, %v1952_v26  ;;  %vm2618_vm4 = vcmask 458112  }
 0x341   : > { %v1783_v50 = vpop.f32.mrb[0].mxu1 }
 0x342   : > { %v3821_v51 = vadd.f32 %v1783_v50, %v3793_v23  ;;  %v1785_v52 = vpop.f32.mrb[1].mxu1  ;;  %v2072_v50 = vrot.slane %v3841_v2, %v1959_v32 }
 0x343   : > { %v3824_v53 = vadd.f32 %v1785_v52, %v3796_v24  ;;  %v1787_v54 = vpop.f32.mrb[2].mxu1  ;;  %v2128_v52 = vrot.slane %v3865_v11, %v1959_v32  ;;  %v3576_v32 = vmov 0  }
 0x344   : > { %v1790_v55 = vrot.slane %v3821_v51, 4  ;;  %v1788_v56 = vpop.f32.mrb[3].mxu1  ;;  %v3574_v54 = vmov 1983009808   ;;  %3132 = vset.pattern.permute.xlu1 %v3576_v32  ;;  %3131 = vset.pattern.permute.xlu0 %v3576_v32 }
 0x345   : > { %v1796_v30 = vrot.slane %v3824_v53, 4 }
 0x346   : > { %v1791_v57 = vadd.f32 %v3821_v51, %v1790_v55  ;;  %v1827_v55 = vunpack.c.l.s4 %v3574_v54 }
 0x347   : > { %v1797_v58 = vadd.f32 %v3824_v53, %v1796_v30 }
 0x348   : > { %v1792_v45 = vrot.slane %v1791_v57, 2 }
 0x349   : > { %v1798_v59 = vrot.slane %v1797_v58, 2 }
 0x34a   : > { %v1793_v60 = vadd.f32 %v1792_v45, %v1791_v57  ;;  %v1828_v57 = vunpack.c.0.s8 %v1827_v55 }
 0x34b   : > { %v1799_v61 = vadd.f32 %v1798_v59, %v1797_v58  ;;  %v3575_v58 = vmov 1934713408  }
 0x34c   : > { %v1794_v23 = vrot.slane %v1793_v60, 1  ;;  %v1859_v45 = vunpack.c.l.s4 %v3575_v58 }
 0x34d   : > { %v1800_v62 = vrot.slane %v1799_v61, 1 }
 0x34e   : > { %v1795_v63 = vadd.f32 %v1794_v23, %v1793_v60 }
 0x34f   : > { %v1801_v24 = vadd.f32 %v1800_v62, %v1799_v61  ;;  %v1831_v61 = vsub.s32 %v1828_v57, %v3781_v34 }
 0x350   : > { %v3830_v0 = vmul.f32 0.125, %v1795_v63  ;;  %v1860_v63 = vunpack.c.0.s8 %v1859_v45 }
 0x351   : > { %v3834_v1 = vmul.f32 0.125, %v1801_v24 }
 0x352   : > { %1812 = vrot.lane.b32.xlu1 %v3830_v0, %s3571_s26  ;;  %1806 = vrot.lane.b32.xlu0 %v3830_v0, %s3572_s10  ;;  %v1863_v7 = vsub.s32 %v1860_v63, %v3781_v34 }
 0x356   : > { %1816 = vrot.lane.b32.xlu1 %v3834_v1, %s3572_s10  ;;  %1809 = vrot.lane.b32.xlu0 %v3830_v0, %s3573_s12 }
 0x35a   : > { %1822 = vrot.lane.b32.xlu1 %v3834_v1, %s3571_s26  ;;  %1819 = vrot.lane.b32.xlu0 %v3834_v1, %s3573_s12 }
 0x35e   : > { %2032 = vbcast.lane.b32.xlu0 %v2030_v3, 256  ;;  %1895 = vbcast.lane.b32.xlu1 %v3030_v6, 256 }
 0x362   : > { %1997 = vbcast.lane.b32.xlu0 %v1995_v8, 256  ;;  %1913 = vbcast.lane.b32.xlu1 %v1911_v10, 256 }
 0x366   : > { %2095 = vbcast.lane.b32.xlu0 %v2093_v12, 256  ;;  %1920 = vbcast.lane.b32.xlu1 %v1918_v16, 256 }
 0x36a   : > { %2004 = vbcast.lane.b32.xlu0 %v2002_v17, 256  ;;  %1969 = vbcast.lane.b32.xlu1 %v1967_v21, 256 }
 0x36e   : > { %2102 = vbcast.lane.b32.xlu0 %v2100_v25, 256  ;;  %1976 = vbcast.lane.b32.xlu1 %v1974_v27, 256 }
 0x372   : > { %2011 = vbcast.lane.b32.xlu0 %v2009_v28, 256  ;;  %1927 = vbcast.lane.b32.xlu1 %v1925_v29, 256 }
 0x376   : > { %2109 = vbcast.lane.b32.xlu0 %v2107_v31, 256  ;;  %1983 = vbcast.lane.b32.xlu1 %v1981_v33, 256 }
 0x37a   : > { %2018 = vbcast.lane.b32.xlu0 %v2016_v35, 256  ;;  %2025 = vbcast.lane.b32.xlu1 %v2023_v36, 256 }
 0x37e   : > { %2116 = vbcast.lane.b32.xlu0 %v2114_v37, 256  ;;  %1934 = vbcast.lane.b32.xlu1 %v1932_v38, 256 }
 0x382   : > { %2123 = vbcast.lane.b32.xlu0 %v2121_v39, 256  ;;  %1990 = vbcast.lane.b32.xlu1 %v1988_v40, 256 }
 0x386   : > { %2039 = vbcast.lane.b32.xlu1 %v2037_v41, 256 }
 0x38a   : > { %2081 = vbcast.lane.b32.xlu1 %v2079_v42, 256 }
 0x38e   : > { %2088 = vbcast.lane.b32.xlu1 %v2086_v43, 256 }
 0x392   : > { %1941 = vbcast.lane.b32.xlu1 %v1939_v44, 256 }
 0x396   : > { %2046 = vbcast.lane.b32.xlu1 %v2044_v46, 256 }
 0x39a   : > { %1948 = vbcast.lane.b32.xlu1 %v1946_v13, 256 }
 0x39e   : > { %2053 = vbcast.lane.b32.xlu1 %v2051_v47, 256 }
 0x3a2   : > { %1955 = vbcast.lane.b32.xlu1 %v1953_v48, 256 }
 0x3a6   : > { %2060 = vbcast.lane.b32.xlu1 %v2058_v15, 256 }
 0x3aa   : > { %1962 = vbcast.lane.b32.xlu1 %v1960_v22, 256 }
 0x3ae   : > { %2067 = vbcast.lane.b32.xlu1 %v2065_v49, 256 }
 0x3b2   : > { %2074 = vbcast.lane.b32.xlu1 %v2072_v50, 256 }
 0x3b6   : > { %2130 = vbcast.lane.b32.xlu1 %v2128_v52, 256 }
 0x3c4   : > { %v1813_v56 = vpop.permute.xlu1 %1812  ;;  %v1807_v30 = vpop.permute.xlu0 %1806 }
 0x3c5   : > { %v1833_v23 = vcombine.low %v1807_v30, %v1813_v56 }
 0x3c7   : > { %v1840_v4 = vrot.slane %v1833_v23, %v1831_v61 }
 0x3c8   : > { %v1817_v59 = vpop.permute.xlu1 %1816  ;;  %v1810_v60 = vpop.permute.xlu0 %1809 }
 0x3c9   : > { %v1825_v62 = vcombine.low %v3830_v0, %v1810_v60 }
 0x3cb   : > { %v1832_v24 = vrot.slane %v1825_v62, %v1831_v61 }
 0x3cc   : > { %v1823_v2 = vpop.permute.xlu1 %1822  ;;  %v1820_v3 = vpop.permute.xlu0 %1819 }
 0x3cd   : > { %v1849_v5 = vcombine.low %v1817_v59, %v1823_v2  ;;  %v1841_v6 = vcombine.low %v3834_v1, %v1820_v3  ;;  %v1857_v8 = vcombine.low %v1832_v24, %v1840_v4  ;;  %v1883_v1 = vld [vmem:[%s4172_s4] sm:$0xff] }
 0x3cf   : > { %v1856_v9 = vrot.slane %v1849_v5, %v1831_v61  ;;  %v1848_v10 = vrot.slane %v1841_v6, %v1831_v61  ;;  %v1864_v12 = vrot.slane %v1857_v8, %v1863_v7 }
 0x3d0   : > { %v1896_v33 = vpop.permute.xlu1 %1895  ;;  %v2033_v36 = vpop.permute.xlu0 %2032 }
 0x3d1   : > { %v1865_v11 = vcombine.low %v1848_v10, %v1856_v9 }
 0x3d3   : > { %v1872_v14 = vrot.slane %v1865_v11, %v1863_v7 }
 0x3d4   : > { %v1914_v35 = vpop.permute.xlu1 %1913  ;;  %v1998_v38 = vpop.permute.xlu0 %1997 }
 0x3d5   : > { %v1873_v16 = vcombine.low %v1864_v12, %v1872_v14 }
 0x3d7   : > { %v1875_v0 = vsel %vm1874_vm5, %v1873_v16, 0.0 }
 0x3d8   : > { %v1876_v17 = vrot.slane %v1875_v0, 4  ;;  %v1921_v37 = vpop.permute.xlu1 %1920  ;;  %v2096_v40 = vpop.permute.xlu0 %2095 }
 0x3da   : > { %v1877_v18 = vadd.f32 %v1876_v17, %v1875_v0 }
 0x3dc   : > { %v1878_v21 = vrot.slane %v1877_v18, 2  ;;  %v1970_v39 = vpop.permute.xlu1 %1969  ;;  %v2005_v42 = vpop.permute.xlu0 %2004 }
 0x3de   : > { %v1879_v25 = vadd.f32 %v1878_v21, %v1877_v18 }
 0x3e0   : > { %v1880_v26 = vrot.slane %v1879_v25, 1  ;;  %v1977_v41 = vpop.permute.xlu1 %1976  ;;  %v3908_v44 = vpop.permute.xlu0 %2102 }
 0x3e2   : > { %v1881_v27 = vadd.f32 %v1880_v26, %v1879_v25 }
 0x3e4   : > { %v1882_v28 = vmul.f32 0.125, %v1881_v27  ;;  %v1928_v43 = vpop.permute.xlu1 %1927  ;;  %v3910_v13 = vpop.permute.xlu0 %2011 }
 0x3e6   : > { %v1884_v29 = vmul.f32 %v1883_v1, %v1882_v28 }
 0x3e8   : > { %v1885_v31 = vsel %vm1874_vm5, %v1884_v29, 0.0  ;;  %v1984_v46 = vpop.permute.xlu1 %1983  ;;  %v3912_v48 = vpop.permute.xlu0 %2109 }
 0x3e9   : > { %1886 = vadd.xlane.f32.xlu0 %v1885_v31 }
 0x3ec   : > { %v2026_v47 = vpop.permute.xlu1 %2025  ;;  %v3914_v22 = vpop.permute.xlu0 %2018 }
 0x3f0   : > { %v1935_v15 = vpop.permute.xlu1 %1934  ;;  %v3916_v50 = vpop.permute.xlu0 %2116 }
 0x3f4   : > { %v1991_v49 = vpop.permute.xlu1 %1990  ;;  %v3918_v54 = vpop.permute.xlu0 %2123 }
 0x3f8   : > { %v2040_v52 = vpop.permute.xlu1 %2039 }
 0x3fc   : > { %v2082_v55 = vpop.permute.xlu1 %2081 }
 0x400   : > { %v2089_v57 = vpop.permute.xlu1 %2088 }
 0x404   : > { %v1942_v60 = vpop.permute.xlu1 %1941 }
 0x408   : > { %v2047_v24 = vpop.permute.xlu1 %2046 }
 0x40c   : > { %v1949_v4 = vpop.permute.xlu1 %1948 }
 0x410   : > { %v2054_v9 = vpop.permute.xlu1 %2053 }
 0x414   : > { %v1956_v12 = vpop.permute.xlu1 %1955 }
 0x418   : > { %v2061_v18 = vpop.permute.xlu1 %2060 }
 0x41c   : > { %v1963_v26 = vpop.permute.xlu1 %1962 }
 0x420   : > { %v2068_v31 = vpop.permute.xlu1 %2067 }
 0x476   : > { %v1887_v56 = vpop.xlane.xlu0 %1886 }
 0x477   : > { %v1898_v30 = vadd.f32 %v1896_v33, %v1887_v56 }
 0x479   : > { %v3920_v58 = vmax.f32 %v1898_v30, 0.0 }
 0x47b   : > { %v2164_v45 = vmul.f32 %v1914_v35, %v3920_v58  ;;  %v2165_v59 = vmul.f32 %v1921_v37, %v3920_v58  ;;  %v2172_v61 = vmul.f32 %v1970_v39, %v3920_v58  ;;  %v2173_v23 = vmul.f32 %v1977_v41, %v3920_v58  ;;  %v2075_v35 = vpop.permute.xlu1 %2074 }
 0x47c   : > { %v2166_v62 = vmul.f32 %v1928_v43, %v3920_v58  ;;  %v2174_v63 = vmul.f32 %v1984_v46, %v3920_v58  ;;  %v2180_v2 = vmul.f32 %v2026_v47, %v3920_v58  ;;  %v2181_v3 = vmul.f32 %v2033_v36, %v3920_v58  ;;  %v3963_v43 = vld [vmem:[%s4175_s7] ss:$0 sm:$0xff] }
 0x47d   : > { %2232 = vperm.xlu1 %3132, %v2165_v59   ;;  %2229 = vperm.xlu0 %3131, %v2164_v45   ;;  %v2167_v5 = vmul.f32 %v1935_v15, %v3920_v58  ;;  %v2175_v6 = vmul.f32 %v1991_v49, %v3920_v58  ;;  %v2182_v7 = vmul.f32 %v2040_v52, %v3920_v58 }
 0x47e   : > { %v2188_v8 = vmul.f32 %v2082_v55, %v3920_v58  ;;  %v2189_v10 = vmul.f32 %v2089_v57, %v3920_v58  ;;  %v2168_v11 = vmul.f32 %v1942_v60, %v3920_v58  ;;  %v2176_v14 = vmul.f32 %v1998_v38, %v3920_v58 }
 0x47f   : > { %v2183_v16 = vmul.f32 %v2047_v24, %v3920_v58  ;;  %v2190_v0 = vmul.f32 %v2096_v40, %v3920_v58  ;;  %v2169_v17 = vmul.f32 %v1949_v4, %v3920_v58  ;;  %v2177_v21 = vmul.f32 %v2005_v42, %v3920_v58  ;;  %v2131_v40 = vpop.permute.xlu1 %2130 }
 0x480   : > { %v2184_v25 = vmul.f32 %v2054_v9, %v3920_v58  ;;  %v2191_v27 = vmul.f32 %v3908_v44, %v3920_v58  ;;  %v2170_v1 = vmul.f32 %v1956_v12, %v3920_v58  ;;  %v2178_v28 = vmul.f32 %v3910_v13, %v3920_v58 }
 0x481   : > { %2253 = vperm.xlu1 %3132, %v2172_v61   ;;  %2256 = vperm.xlu0 %3131, %v2173_v23   ;;  %v2185_v29 = vmul.f32 %v2061_v18, %v3920_v58  ;;  %v2192_v32 = vmul.f32 %v3912_v48, %v3920_v58  ;;  %v2171_v33 = vmul.f32 %v1963_v26, %v3920_v58  ;;  %v3981_v60 = vand.u32 127, %v456_v19 }
 0x482   : > { %v2179_v36 = vmul.f32 %v3914_v22, %v3920_v58  ;;  %v2186_v37 = vmul.f32 %v2068_v31, %v3920_v58  ;;  %v2193_v38 = vmul.f32 %v3916_v50, %v3920_v58  ;;  %v2187_v39 = vmul.f32 %v2075_v35, %v3920_v58 }
 0x483   : > { %v2194_v41 = vmul.f32 %v3918_v54, %v3920_v58  ;;  %v2195_v42 = vmul.f32 %v2131_v40, %v3920_v58 }
 0x485   : > { %2235 = vperm.xlu1 %3132, %v2166_v62   ;;  %2259 = vperm.xlu0 %3131, %v2174_v63   ;;  %v3987_v62 = vsub.s32 %v3981_v60, %v3781_v34 }
 0x489   : > { %2277 = vperm.xlu1 %3132, %v2180_v2   ;;  %2280 = vperm.xlu0 %3131, %v2181_v3  }
 0x48d   : > { %2238 = vperm.xlu1 %3132, %v2167_v5   ;;  %2262 = vperm.xlu0 %3131, %v2175_v6  }
 0x491   : > { %2283 = vperm.xlu1 %3132, %v2182_v7   ;;  %2301 = vperm.xlu0 %3131, %v2188_v8  }
 0x495   : > { %2304 = vperm.xlu1 %3132, %v2189_v10   ;;  %2241 = vperm.xlu0 %3131, %v2168_v11  }
 0x499   : > { %2265 = vperm.xlu1 %3132, %v2176_v14   ;;  %2286 = vperm.xlu0 %3131, %v2183_v16  }
 0x49d   : > { %2307 = vperm.xlu1 %3132, %v2190_v0   ;;  %2244 = vperm.xlu0 %3131, %v2169_v17  }
 0x4a1   : > { %2268 = vperm.xlu1 %3132, %v2177_v21   ;;  %2289 = vperm.xlu0 %3131, %v2184_v25  }
 0x4a5   : > { %2310 = vperm.xlu1 %3132, %v2191_v27   ;;  %2247 = vperm.xlu0 %3131, %v2170_v1  }
 0x4a9   : > { %2271 = vperm.xlu1 %3132, %v2178_v28   ;;  %2292 = vperm.xlu0 %3131, %v2185_v29  }
 0x4ad   : > { %2313 = vperm.xlu1 %3132, %v2192_v32   ;;  %2250 = vperm.xlu0 %3131, %v2171_v33  }
 0x4b1   : > { %2274 = vperm.xlu1 %3132, %v2179_v36   ;;  %2295 = vperm.xlu0 %3131, %v2186_v37  }
 0x4b5   : > { %2316 = vperm.xlu1 %3132, %v2193_v38   ;;  %2298 = vperm.xlu0 %3131, %v2187_v39  }
 0x4b9   : > { %2319 = vperm.xlu1 %3132, %v2194_v41   ;;  %2322 = vperm.xlu0 %3131, %v2195_v42  }
 0x4bd   : > { %2513 = vbcast.lane.b32.xlu1 %v3963_v43, 256 }
 0x4fc   : > { %v2233_v44 = vpop.permute.xlu1 %2232  ;;  %v2230_v46 = vpop.permute.xlu0 %2229 }
 0x4fd   : > { %v2333_v2 = vrot.slane %v2233_v44, %v3987_v62  ;;  %v2329_v3 = vrot.slane %v2230_v46, %v3987_v62 }
 0x4ff   : > { %v2455_v11 = vsel %vm2454_vm6, %v2333_v2, %v2329_v3 }
 0x500   : > { %v2254_v13 = vpop.permute.xlu1 %2253  ;;  %v2257_v47 = vpop.permute.xlu0 %2256 }
 0x501   : > { %v2361_v19 = vrot.slane %v2254_v13, %v3987_v62  ;;  %v2365_v5 = vrot.slane %v2257_v47, %v3987_v62 }
 0x503   : > { %v2468_v17 = vsel %vm2454_vm6, %v2365_v5, %v2361_v19 }
 0x504   : > { %v2236_v48 = vpop.permute.xlu1 %2235  ;;  %v2260_v15 = vpop.permute.xlu0 %2259 }
 0x505   : > { %v2337_v4 = vrot.slane %v2236_v48, %v3987_v62  ;;  %v2369_v8 = vrot.slane %v2260_v15, %v3987_v62 }
 0x507   : > { %v2457_v14 = vsel %vm2456_vm7, %v2337_v4, %v2455_v11  ;;  %v2469_v26 = vsel %vm2456_vm7, %v2369_v8, %v2468_v17 }
 0x508   : > { %v3966_v22 = vpop.permute.xlu1 %2277  ;;  %v3968_v49 = vpop.permute.xlu0 %2280 }
 0x509   : > { %v2393_v27 = vrot.slane %v3966_v22, %v3987_v62  ;;  %v2397_v31 = vrot.slane %v3968_v49, %v3987_v62 }
 0x50b   : > { %v2475_v15 = vsel %vm2454_vm6, %v2397_v31, %v2393_v27 }
 0x50c   : > { %v2239_v50 = vpop.permute.xlu1 %2238  ;;  %v2263_v52 = vpop.permute.xlu0 %2262 }
 0x50d   : > { %v2341_v6 = vrot.slane %v2239_v50, %v3987_v62  ;;  %v2373_v16 = vrot.slane %v2263_v52, %v3987_v62 }
 0x50f   : > { %v2459_v18 = vsel %vm2458_vm8, %v2341_v6, %v2457_v14  ;;  %v2470_v36 = vsel %vm2458_vm8, %v2373_v16, %v2469_v26 }
 0x510   : > { %v3970_v54 = vpop.permute.xlu1 %2283  ;;  %v3972_v55 = vpop.permute.xlu0 %2301 }
 0x511   : > { %v2401_v37 = vrot.slane %v3970_v54, %v3987_v62 }
 0x513   : > { %v2476_v52 = vsel %vm2456_vm7, %v2401_v37, %v2475_v15 }
 0x514   : > { %v3974_v56 = vpop.permute.xlu1 %2304  ;;  %v2242_v30 = vpop.permute.xlu0 %2241 }
 0x515   : > { %v2345_v9 = vrot.slane %v2242_v30, %v3987_v62  ;;  %v2429_v22 = vrot.slane %v3974_v56, %v3987_v62 }
 0x517   : > { %v2461_v1 = vsel %vm2460_vm9, %v2345_v9, %v2459_v18 }
 0x518   : > { %v2266_v57 = vpop.permute.xlu1 %2265  ;;  %v3976_v58 = vpop.permute.xlu0 %2286 }
 0x519   : > { %v2377_v21 = vrot.slane %v2266_v57, %v3987_v62  ;;  %v2405_v40 = vrot.slane %v3976_v58, %v3987_v62  ;;  %v2425_v58 = vrot.slane %v3972_v55, %v3987_v62 }
 0x51b   : > { %v2471_v39 = vsel %vm2460_vm9, %v2377_v21, %v2470_v36  ;;  %v2482_v3 = vsel %vm2454_vm6, %v2429_v22, %v2425_v58  ;;  %v2613_v58 = vadd.s32 4294967248, %v3981_v60  ;;  %vm2625_vm6 = vcmask 523712  }
 0x51c   : > { %v3978_v45 = vpop.permute.xlu1 %2307  ;;  %v2245_v59 = vpop.permute.xlu0 %2244 }
 0x51d   : > { %v2349_v12 = vrot.slane %v2245_v59, %v3987_v62  ;;  %v2433_v54 = vrot.slane %v3978_v45, %v3987_v62  ;;  %v2477_v59 = vsel %vm2458_vm8, %v2405_v40, %v2476_v52  ;;  %v2601_v52 = vadd.s32 4294967264, %v3981_v60 }
 0x51f   : > { %v2463_v32 = vsel %vm2462_vm10, %v2349_v12, %v2461_v1  ;;  %v2483_v5 = vsel %vm2456_vm7, %v2433_v54, %v2482_v3  ;;  %v2628_v54 = vadd.s32 4294967232, %v3981_v60  ;;  %v2633_v3 = vadd.s32 4294967224, %v3981_v60 }
 0x520   : > { %v2269_v61 = vpop.permute.xlu1 %2268  ;;  %v3983_v23 = vpop.permute.xlu0 %2289  ;;  %vm2645_vm7 = vcmask 720512  }
 0x521   : > { %v2381_v28 = vrot.slane %v2269_v61, %v3987_v62  ;;  %v2409_v46 = vrot.slane %v3983_v23, %v3987_v62 }
 0x523   : > { %v2472_v44 = vsel %vm2462_vm10, %v2381_v28, %v2471_v39 }
 0x524   : > { %v3989_v63 = vpop.permute.xlu1 %2310  ;;  %v2248_v24 = vpop.permute.xlu0 %2247 }
 0x525   : > { %v2353_v0 = vrot.slane %v2248_v24, %v3987_v62  ;;  %v2437_v56 = vrot.slane %v3989_v63, %v3987_v62  ;;  %v2478_v24 = vsel %vm2460_vm9, %v2409_v46, %v2477_v59  ;;  %v2640_v59 = vadd.s32 4294967216, %v3981_v60 }
 0x527   : > { %v2465_v38 = vsel %vm2464_vm11, %v2353_v0, %v2463_v32  ;;  %v2484_v6 = vsel %vm2458_vm8, %v2437_v56, %v2483_v5  ;;  %v2667_v56 = vadd.s32 4294967184, %v3981_v60  ;;  %v2643_v5 = vsub.s32 %v2640_v59, %v3781_v34 }
 0x528   : > { %v2272_v7 = vpop.permute.xlu1 %2271  ;;  %v2293_v10 = vpop.permute.xlu0 %2292  ;;  %vm2652_vm8 = vcmask 786112  }
 0x529   : > { %v2385_v33 = vrot.slane %v2272_v7, %v3987_v62  ;;  %v2413_v49 = vrot.slane %v2293_v10, %v3987_v62 }
 0x52b   : > { %v2473_v50 = vsel %vm2464_vm11, %v2385_v33, %v2472_v44  ;;  %v2479_v4 = vsel %vm2462_vm10, %v2413_v49, %v2478_v24 }
 0x52c   : > { %v2314_v25 = vpop.permute.xlu1 %2313  ;;  %v2251_v29 = vpop.permute.xlu0 %2250 }
 0x52d   : > { %v2357_v35 = vrot.slane %v2251_v29, %v3987_v62  ;;  %v2441_v2 = vrot.slane %v2314_v25, %v3987_v62 }
 0x52f   : > { %v2467_v42 = vsel %vm2466_vm12, %v2357_v35, %v2465_v38  ;;  %v2485_v9 = vsel %vm2460_vm9, %v2441_v2, %v2484_v6  ;;  %v2579_v2 = vadd.s32 4294967288, %v3981_v60  ;;  %v2593_v6 = vadd.s32 4294967272, %v3981_v60 }
 0x530   : > { %v2275_v41 = vpop.permute.xlu1 %2274  ;;  %v2296_v47 = vpop.permute.xlu0 %2295  ;;  %v2494_v48 = vsel %vm2493_vm13, %v2467_v42, 0.0  ;;  %vm2672_vm9 = vcmask 982912  }
 0x531   : > { %v2389_v13 = vrot.slane %v2275_v41, %v3987_v62  ;;  %2495 = vadd.xlane.f32.xlu1 %v2494_v48  ;;  %v2417_v30 = vrot.slane %v2296_v47, %v3987_v62 }
 0x533   : > { %v2474_v57 = vsel %vm2466_vm12, %v2389_v13, %v2473_v50  ;;  %v2480_v63 = vsel %vm2464_vm11, %v2417_v30, %v2479_v4  ;;  %v2655_v30 = vadd.s32 4294967200, %v3981_v60  ;;  %v2660_v4 = vadd.s32 4294967192, %v3981_v60 }
 0x534   : > { %v2317_v61 = vpop.permute.xlu1 %2316  ;;  %v2497_v23 = vsel %vm2493_vm13, %v2474_v57, 0.0  ;;  %v2299_v45 = vpop.permute.xlu0 %2298  ;;  %v2586_v57 = vadd.s32 4294967280, %v3981_v60 }
 0x535   : > { %2498 = vadd.xlane.f32.xlu0 %v2497_v23  ;;  %v2445_v55 = vrot.slane %v2317_v61, %v3987_v62  ;;  %v2421_v19 = vrot.slane %v2299_v45, %v3987_v62  ;;  %v2604_v61 = vsub.s32 %v2601_v52, %v3781_v34  ;;  %v2631_v23 = vsub.s32 %v2628_v54, %v3781_v34 }
 0x536   : > { %v2658_v24 = vsub.s32 %v2655_v30, %v3781_v34  ;;  %v2606_v45 = vadd.s32 4294967256, %v3981_v60 }
 0x537   : > { %v2481_v8 = vsel %vm2466_vm12, %v2421_v19, %v2480_v63  ;;  %v2486_v14 = vsel %vm2462_vm10, %v2445_v55, %v2485_v9  ;;  %v2589_v55 = vsub.s32 %v2586_v57, %v3781_v34  ;;  %v2616_v19 = vsub.s32 %v2613_v58, %v3781_v34 }
 0x538   : > { %v2320_v7 = vpop.permute.xlu1 %2319  ;;  %v2323_v11 = vpop.permute.xlu0 %2322  ;;  %v2500_v12 = vsel %vm2493_vm13, %v2481_v8, 0.0  ;;  %v2670_v63 = vsub.s32 %v2667_v56, %v3781_v34  ;;  %v2647_v8 = vadd.s32 4294967208, %v3981_v60  ;;  %v2674_v9 = vadd.s32 4294967176, %v3981_v60 }
 0x539   : > { %v2449_v10 = vrot.slane %v2320_v7, %v3987_v62  ;;  %v2453_v16 = vrot.slane %v2323_v11, %v3987_v62  ;;  %2501 = vadd.xlane.f32.xlu0 %v2500_v12  ;;  %v2620_v7 = vadd.s32 4294967240, %v3981_v60  ;;  %v2582_v11 = vsub.s32 %v2579_v2, %v3781_v34 }
 0x53a   : > { %v2609_v12 = vsub.s32 %v2606_v45, %v3781_v34  ;;  %v2650_v60 = vsub.s32 %v2647_v8, %v3781_v34  ;;  %vm2679_vm10 = vcmask 1048512  }
 0x53b   : > { %v2487_v0 = vsel %vm2464_vm11, %v2449_v10, %v2486_v14  ;;  %v2636_v14 = vsub.s32 %v2633_v3, %v3781_v34  ;;  %vm2683_vm11 = vcmask 523264  }
 0x53c   : > { %v2488_v17 = vsel %vm2466_vm12, %v2453_v16, %v2487_v0  ;;  %v2514_v21 = vpop.permute.xlu1 %2513  ;;  %v2663_v16 = vsub.s32 %v2660_v4, %v3781_v34  ;;  %v2596_v0 = vsub.s32 %v2593_v6, %v3781_v34  ;;  %vm2685_vm12 = vcmask 785408  }
 0x53d   : > { %v2503_v18 = vsel %vm2493_vm13, %v2488_v17, 0.0  ;;  %v2623_v17 = vsub.s32 %v2620_v7, %v3781_v34 }
 0x53e   : > { %2504 = vadd.xlane.f32.xlu0 %v2503_v18 }
 0x542   : > { %2521 = vbcast.lane.b32.xlu1 %v3963_v43, 272 }
 0x546   : > { %2525 = vbcast.lane.b32.xlu1 %v3963_v43, 280 }
 0x554   : > { %2517 = vbcast.lane.b32.xlu0 %v3963_v43, 264 }
 0x5be   : > { %v2496_v25 = vpop.xlane.xlu1 %2495 }
 0x5bf   : > { %v2531_v26 = vadd.f32 %v2514_v21, %v2496_v25 }
 0x5c1   : > { %v3032_v27 = vmul.f32 -1.442695, %v2531_v26 }
 0x5c2   : > { %v2499_v1 = vpop.xlane.xlu0 %2498  ;;  %v2522_v28 = vpop.permute.xlu1 %2521 }
 0x5c3   : > { %3421 = vpow2.f32 %v3032_v27  ;;  %v2677_v27 = vsub.s32 %v2674_v9, %v3781_v34 }
 0x5c6   : > { %v2502_v29 = vpop.xlane.xlu0 %2501  ;;  %v2526_v32 = vpop.permute.xlu1 %2525 }
 0x5c7   : > { %v2533_v31 = vadd.f32 %v2522_v28, %v2502_v29 }
 0x5c9   : > { %v3034_v33 = vmul.f32 -1.442695, %v2533_v31 }
 0x5cb   : > { %v2505_v35 = vpop.xlane.xlu0 %2504  ;;  %3423 = vpow2.f32 %v3034_v33 }
 0x5cc   : > { %v2534_v36 = vadd.f32 %v2526_v32, %v2505_v35 }
 0x5cd   : > { %v3422_v37 = vpop.eup %3421 }
 0x5ce   : > { %v2547_v38 = vadd.f32 1.0, %v3422_v37  ;;  %v3035_v39 = vmul.f32 -1.442695, %v2534_v36 }
 0x5cf   : > { %v2518_v40 = vpop.permute.xlu0 %2517 }
 0x5d0   : > { %v2532_v41 = vadd.f32 %v2518_v40, %v2499_v1  ;;  %3425 = vrcp.f32 %v2547_v38 }
 0x5d1   : > { %3427 = vpow2.f32 %v3035_v39 }
 0x5d2   : > { %v3033_v43 = vmul.f32 -1.442695, %v2532_v41 }
 0x5d4   : > { %3429 = vpow2.f32 %v3033_v43 }
 0x5d5   : > { %v3424_v42 = vpop.eup %3423 }
 0x5d6   : > { %v2549_v44 = vadd.f32 1.0, %v3424_v42 }
 0x5d8   : > { %3431 = vrcp.f32 %v2549_v44 }
 0x5da   : > { %v3426_v46 = vpop.eup %3425 }
 0x5db   : > { %2564 = vperm.xlu1 %3132, %v3426_v46   ;;  %v3428_v13 = vpop.eup %3427 }
 0x5dc   : > { %v2550_v15 = vadd.f32 1.0, %v3428_v13 }
 0x5de   : > { %v3430_v47 = vpop.eup %3429 }
 0x5df   : > { %v2548_v48 = vadd.f32 1.0, %v3430_v47 }
 0x5e1   : > { %3433 = vrcp.f32 %v2548_v48 }
 0x5e2   : > { %v3432_v22 = vpop.eup %3431  ;;  %3435 = vrcp.f32 %v2550_v15 }
 0x5e3   : > { %2570 = vperm.xlu1 %3132, %v3432_v22  }
 0x5eb   : > { %v3434_v49 = vpop.eup %3433 }
 0x5ec   : > { %2567 = vperm.xlu0 %3131, %v3434_v49   ;;  %v3436_v50 = vpop.eup %3435 }
 0x5f0   : > { %2573 = vperm.xlu0 %3131, %v3436_v50  }
 0x65a   : > { %v2565_v10 = vpop.permute.xlu1 %2564 }
 0x65b   : > { %v2578_v18 = vrot.slane %v2565_v10, %v3987_v62  ;;  %v2605_v21 = vrot.slane %v2565_v10, %v2604_v61  ;;  %v2632_v25 = vrot.slane %v2565_v10, %v2631_v23  ;;  %v2659_v33 = vrot.slane %v2565_v10, %v2658_v24  ;;  %v3437_v61 = vld [vmem:[%s3748_s23] sm:$0xff]  ;;  %v3438_v24 = vld [vmem:[%s3748_s23 + $0x8] sm:$0xff]  ;;  %s3577_s23 = smov [#allocation7]  }
 0x65c   : > { %s3499_s24 = sshll.u32 %s3577_s23, 4  ;;  %s3500_s24 = int_to_ptr.vmem [resolvable:$false] %s3499_s24 }
 0x65d   : > { %s3501_s25 = scalar_lea.vmem %s3500_s24, 512  ;;  %p3502_p4 = scmp.lt.s32.totalorder %s4126_s14, %s3500_s24 }
 0x65e   : > { %p3503_p7 = scmp.lt.s32.totalorder %s3501_s25, %s3495_s21 }
 0x660   : > { %p3504_p8 = por %p3503_p7, %p3502_p4 }
 0x662   : > { %v2571_v1 = vpop.permute.xlu1 %2570  ;;  %p3505_p11 = pnand %p3504_p8, %p3498_p3 }
 0x663   : > { %v2590_v37 = vrot.slane %v2571_v1, %v2589_v55  ;;  %v2617_v38 = vrot.slane %v2571_v1, %v2616_v19  ;;  %v2644_v34 = vrot.slane %v2571_v1, %v2643_v5  ;;  %v2671_v46 = vrot.slane %v2571_v1, %v2670_v63 }
 0x66b   : > { %v2568_v26 = vpop.permute.xlu0 %2567 }
 0x66c   : > { %v2583_v28 = vrot.slane %v2568_v26, %v2582_v11  ;;  %v2610_v29 = vrot.slane %v2568_v26, %v2609_v12  ;;  %v2637_v31 = vrot.slane %v2568_v26, %v2636_v14  ;;  %v2664_v32 = vrot.slane %v2568_v26, %v2663_v16 }
 0x66e   : > { %v2585_v35 = vsel %vm2584_vm14, %v2583_v28, %v2578_v18  ;;  %v2612_v36 = vsel %vm2611_vm15, %v2610_v29, %v2605_v21  ;;  %v2639_v62 = vsel %vm2638_vm0, %v2637_v31, %v2632_v25  ;;  %v2666_v39 = vsel %vm2665_vm1, %v2664_v32, %v2659_v33 }
 0x66f   : > { %v2574_v40 = vpop.permute.xlu0 %2573  ;;  %v2592_v13 = vsel %vm2591_vm2, %v2590_v37, %v2585_v35  ;;  %v2619_v47 = vsel %vm2618_vm4, %v2617_v38, %v2612_v36  ;;  %v2646_v48 = vsel %vm2645_vm7, %v2644_v34, %v2639_v62  ;;  %v2673_v50 = vsel %vm2672_vm9, %v2671_v46, %v2666_v39 }
 0x670   : > { %v2597_v41 = vrot.slane %v2574_v40, %v2596_v0  ;;  %v2624_v43 = vrot.slane %v2574_v40, %v2623_v17  ;;  %v2651_v42 = vrot.slane %v2574_v40, %v2650_v60  ;;  %v2678_v44 = vrot.slane %v2574_v40, %v2677_v27 }
 0x672   : > { %v2599_v15 = vsel %vm2598_vm3, %v2597_v41, %v2592_v13  ;;  %v2626_v22 = vsel %vm2625_vm6, %v2624_v43, %v2619_v47  ;;  %v2653_v49 = vsel %vm2652_vm8, %v2651_v42, %v2646_v48  ;;  %v2680_v54 = vsel %vm2679_vm10, %v2678_v44, %v2673_v50 }
 0x673   : > { %v2682_v52 = vsel %vm1874_vm5, %v2599_v15, %v2626_v22 }
 0x674   : > { %v2684_v30 = vsel %vm2683_vm11, %v2682_v52, %v2653_v49 }
 0x675   : > { %v2686_v57 = vsel %vm2685_vm12, %v2684_v30, %v2680_v54 }
 0x676   : > { %v2690_v58 = vrot.slane %v2686_v57, %v3784_v20 }
 0x678   : > { %v2691_v59 = vmul.f32 %v3821_v51, %v2690_v58  ;;  %v2692_v56 = vmul.f32 %v3824_v53, %v2690_v58 }
 0x67a   : > { %v2693_v23 = vadd.f32 %v3437_v61, %v2691_v59  ;;  %v2694_v2 = vadd.f32 %v3438_v24, %v2692_v56 }
 0x67c   : > { %v2695_v45 = vmax.f32 %v2693_v23, 0.0  ;;  %v2696_v3 = vmax.f32 %v2694_v2, 0.0 }
 0x67e   : > { %2697 = vst [vmem:[%s328_s29] sm:$0xff] %v2695_v45  ;;  %2698 = vst [vmem:[%s328_s29 + $0x8] sm:$0xff] %v2696_v3 }
 0x67f   : > { %3508 = shalt.err (!%p3505_p11)
}
 0x680   : > { %s3509_s26 = scalar_lea.hbm %s4124_s22, 256  ;;  %s3513_s13 = scalar_lea.hbm %s4176_s8, 512 }
 0x681   : > { %p3510_p13 = scmp.ne.s32.totalorder %s4124_s22, %s3509_s26  ;;  %p3514_p6 = scmp.lt.u32.totalorder %s4124_s22, %s4176_s8 }
 0x682   : > { %p3515_p9 = scmp.lt.u32.totalorder %s3513_s13, %s3509_s26  ;;  %p3517_p10 = scmp.lt.u32.totalorder %s3509_s26, %s4124_s22 }
 0x683   : > { %p3511_p5 = pnand %p3510_p13, %p4196_p1 }
 0x684   : > { %p3516_p12 = por %p3515_p9, %p3514_p6 }
 0x685   : > { %p3512_p0 = pneg %p3511_p5 }
 0x686   : > { %p3518_p2 = por %p3517_p10, %p3516_p12 }
 0x688   : > { %p3519_p3 = pnand %p3518_p2, %p3512_p0 }
 0x68a   : > { %3522 = shalt.err (!%p3519_p3)
}
 0x68b   : > { %3071 = dma.vmem_to_hbm [thread:$0]  (%p4196_p1), %s4126_s14, 256, %s4124_s22, %s2700_s9  }
 0x68c PF: > { %p3088_p4 = scmp.ge.s32.totalorder %s3565_s30, 2  ;;  %s2726_s29 = sand.u32 1, %s3553_s27  }
 0x68d   : > { %p4197_p7 = scmp.ne.s32.totalorder %s4184_s16, 0  ;;  %s2727_s17 = scalar_lea.sflag [#allocation4], %s2726_s29 }
 0x68f   : > { %p3081_p8 = pnand %p3088_p4, %p4197_p7 }
 0x691   : > { %3548 = dma.done.wait (!%p3081_p8), %s2727_s17, 256  }
 0x692   : > { %3550 = vsyncadd (!%p3081_p8), %s2727_s17, 4294967040  ;;  %s4198_s20 = sld [smem:[#allocation11_spill]]  ;;  %s4199_s29 = sld [smem:[#allocation12_spill]] }
 0x693   : > { %p20_p11 = scmp.ge.s32.totalorder %s3648_s11, 4   ;;  %s4200_s27 = smov %s3557_s28 }
 0x694   : > { %s4202_s30 = smov %s3648_s11 }
 0x695   :  { %22 = sbr.rel (!%p20_p11) target bundleno = 5 (0x5), region = 96 }
 0x698   : > { %s4201_s28 = smov %s4198_s20 }
 0x69c   :  { %2732 = vsyncpa [#allocation3], 1 }
 0x69d   :  { %2734 = vsyncpa [#allocation3 + $0x1], 1 }
 0x69e   :  { %2735 = vsyncpa [#allocation6], 1 }
 0x69f   :  { %2736 = vsyncpa [#allocation4], 1 }
 0x6a0   :  { %2738 = vsyncpa [#allocation4 + $0x1], 1 }

</bundles_post_ra>
